<compile_context>
chip_gen: v7x
topology: tpu7x:2x2x1
jax: 0.10.0
libtpu: 0.0.40
codegen_flags: <defaults>
</compile_context>

<pallas_src>
from functools import partial

import jax
import jax.numpy as jnp
from jax.experimental import pallas as pl
from jax.experimental.pallas import tpu as pltpu

EPS = 1e-5
NEG_INF = -1e9
_VMEM_LIMIT = 48 * 1024 * 1024  # safe on v5e/v6e (128 MiB) and v7x (64 MiB)


# ----------------------------- in-kernel helpers -----------------------------

def _ln(x, g, b):
    # x: (M, D) f32, g/b: (1, D) f32
    mean = jnp.mean(x, axis=-1, keepdims=True)
    xc = x - mean
    var = jnp.mean(xc * xc, axis=-1, keepdims=True)
    return xc * jax.lax.rsqrt(var + EPS) * g + b


def _mha_oproj(qT, kT, vT, wo_ref, num_heads, mask=None):
    # qT: (D, Tq) f32, kT/vT: (D, Sk) f32 (features on the sublane axis).
    # mask: optional (Tq, Sk) additive f32.  Returns attn @ wo : (Tq, D) f32.
    D, Tq = qT.shape
    Dh = D // num_heads
    proj = jnp.zeros((Tq, D), jnp.float32)
    for i in range(num_heads):
        qh = qT[i * Dh:(i + 1) * Dh, :].astype(jnp.bfloat16)   # (Dh, Tq)
        kh = kT[i * Dh:(i + 1) * Dh, :].astype(jnp.bfloat16)   # (Dh, Sk)
        vh = vT[i * Dh:(i + 1) * Dh, :].astype(jnp.bfloat16)   # (Dh, Sk)
        # scores[t, s] = q[t] . k[s]  (q already pre-scaled by Dh**-0.5)
        s = jax.lax.dot_general(qh, kh, (((0,), (0,)), ((), ())),
                                preferred_element_type=jnp.float32)  # (Tq, Sk)
        if mask is not None:
            s = s + mask
        m = jnp.max(s, axis=-1, keepdims=True)
        p = jnp.exp(s - m)
        p = p * pl.reciprocal(jnp.sum(p, axis=-1, keepdims=True), approx=True)
        oh = jax.lax.dot_general(p.astype(jnp.bfloat16), vh,
                                 (((1,), (1,)), ((), ())),
                                 preferred_element_type=jnp.float32)  # (Tq, Dh)
        proj = proj + jnp.dot(oh.astype(jnp.bfloat16),
                              wo_ref[i * Dh:(i + 1) * Dh, :],
                              preferred_element_type=jnp.float32)
    return proj


# ------------------------------ Pallas kernels --------------------------------

def _self_attn_sublayer_kernel(x_ref, g_ref, b_ref, wqkv_ref, bqkv_ref,
                               wo_ref, bo_ref, o_ref, *, num_heads):
    x = x_ref[0].astype(jnp.float32)                       # (T, D) residual stream
    D = x.shape[-1]
    hln = _ln(x, g_ref[...], b_ref[...])
    # qkvT[n, t] = sum_d wqkv[n, d] * hln[t, d]  -> (3D, T); heads live on sublanes
    qkvT = jax.lax.dot_general(wqkv_ref[...], hln.astype(jnp.bfloat16),
                               (((1,), (1,)), ((), ())),
                               preferred_element_type=jnp.float32) + bqkv_ref[...]
    proj = _mha_oproj(qkvT[:D], qkvT[D:2 * D], qkvT[2 * D:], wo_ref, num_heads)
    o_ref[0] = (x + proj + bo_ref[...]).astype(o_ref.dtype)


def _cross_attn_sublayer_kernel(x_ref, mem_ref, g_ref, b_ref, wq_ref, bq_ref,
                                wkv_ref, bkv_ref, wo_ref, bo_ref, o_ref,
                                *, num_heads, s_valid):
    x = x_ref[0].astype(jnp.float32)                       # (T, D)
    T, D = x.shape
    mem = mem_ref[0]                                       # (S_pad, D) bf16
    S_pad = mem.shape[0]
    hln = _ln(x, g_ref[...], b_ref[...])
    qT = jax.lax.dot_general(wq_ref[...], hln.astype(jnp.bfloat16),
                             (((1,), (1,)), ((), ())),
                             preferred_element_type=jnp.float32) + bq_ref[...]   # (D, T)
    kvT = jax.lax.dot_general(wkv_ref[...], mem,
                              (((1,), (1,)), ((), ())),
                              preferred_element_type=jnp.float32) + bkv_ref[...]  # (2D, S_pad)
    mask = None
    if s_valid < S_pad:   # pad-key mask built in-kernel (no HBM mask DMA)
        col = jax.lax.broadcasted_iota(jnp.int32, (T, S_pad), 1)
        mask = jnp.where(col < s_valid, 0.0, NEG_INF).astype(jnp.float32)
    proj = _mha_oproj(qT, kvT[:D], kvT[D:], wo_ref, num_heads, mask=mask)
    o_ref[0] = (x + proj + bo_ref[...]).astype(o_ref.dtype)


def _ffn_sublayer_kernel(x_ref, g_ref, b_ref, w1_ref, b1_ref, w2_ref, b2_ref,
                         *rest, final_ln):
    if final_ln:
        gf_ref, bf_ref, o_ref = rest
    else:
        (o_ref,) = rest
    x = x_ref[...].astype(jnp.float32)
    h = _ln(x, g_ref[...], b_ref[...])
    h1 = jnp.dot(h.astype(jnp.bfloat16), w1_ref[...],
                 preferred_element_type=jnp.float32) + b1_ref[...]
    h1 = jnp.maximum(h1, 0.0)
    h2 = jnp.dot(h1.astype(jnp.bfloat16), w2_ref[...],
                 preferred_element_type=jnp.float32) + b2_ref[...]
    y = x + h2
    if final_ln:            # decoder's final LayerNorm fused into the last FFN
        y = _ln(y, gf_ref[...], bf_ref[...])
    o_ref[...] = y.astype(o_ref.dtype)


# --------------------------------- wrappers -----------------------------------

def _compiler_params():
    return pltpu.CompilerParams(dimension_semantics=("parallel",),
                                vmem_limit_bytes=_VMEM_LIMIT)


def _row_block(M, cap=512):
    """Largest multiple-of-8 divisor of M that is <= cap; else the whole slab."""
    if M <= cap:
        return M
    best = None
    for bm in range(8, cap + 1, 8):
        if M % bm == 0:
            best = bm
    return best if best is not None else M


def self_attn_sublayer(x_b, p, num_heads):
    B, T, D = x_b.shape
    return pl.pallas_call(
        partial(_self_attn_sublayer_kernel, num_heads=num_heads),
        out_shape=jax.ShapeDtypeStruct((B, T, D), x_b.dtype),
        grid=(B,),
        in_specs=[pl.BlockSpec((1, T, D), lambda b: (b, 0, 0)),
                  pl.BlockSpec((1, D), lambda b: (0, 0)),
                  pl.BlockSpec((1, D), lambda b: (0, 0)),
                  pl.BlockSpec((3 * D, D), lambda b: (0, 0)),
                  pl.BlockSpec((3 * D, 1), lambda b: (0, 0)),
                  pl.BlockSpec((D, D), lambda b: (0, 0)),
                  pl.BlockSpec((1, D), lambda b: (0, 0))],
        out_specs=pl.BlockSpec((1, T, D), lambda b: (b, 0, 0)),
        compiler_params=_compiler_params(),
    )(x_b, p["ln_g"], p["ln_b"], p["wqkv"], p["bqkv"], p["wo"], p["bo"])


def cross_attn_sublayer(x_b, mem_b, p, num_heads, s_valid):
    B, T, D = x_b.shape
    S_pad = mem_b.shape[1]
    return pl.pallas_call(
        partial(_cross_attn_sublayer_kernel, num_heads=num_heads, s_valid=s_valid),
        out_shape=jax.ShapeDtypeStruct((B, T, D), x_b.dtype),
        grid=(B,),
        in_specs=[pl.BlockSpec((1, T, D), lambda b: (b, 0, 0)),
                  pl.BlockSpec((1, S_pad, D), lambda b: (b, 0, 0)),
                  pl.BlockSpec((1, D), lambda b: (0, 0)),
                  pl.BlockSpec((1, D), lambda b: (0, 0)),
                  pl.BlockSpec((D, D), lambda b: (0, 0)),
                  pl.BlockSpec((D, 1), lambda b: (0, 0)),
                  pl.BlockSpec((2 * D, D), lambda b: (0, 0)),
                  pl.BlockSpec((2 * D, 1), lambda b: (0, 0)),
                  pl.BlockSpec((D, D), lambda b: (0, 0)),
                  pl.BlockSpec((1, D), lambda b: (0, 0))],
        out_specs=pl.BlockSpec((1, T, D), lambda b: (b, 0, 0)),
        compiler_params=_compiler_params(),
    )(x_b, mem_b, p["ln_g"], p["ln_b"], p["wq"], p["bq"],
      p["wkv"], p["bkv"], p["wo"], p["bo"])


def ffn_sublayer(x2d, lp, final_ln_params=None):
    M, D = x2d.shape
    FF = lp["w1"].shape[1]
    bm = _row_block(M)
    final_ln = final_ln_params is not None
    args = [x2d, lp["ln3_g"], lp["ln3_b"], lp["w1"], lp["b1"], lp["w2"], lp["b2"]]
    in_specs = [pl.BlockSpec((bm, D), lambda i: (i, 0)),
                pl.BlockSpec((1, D), lambda i: (0, 0)),
                pl.BlockSpec((1, D), lambda i: (0, 0)),
                pl.BlockSpec((D, FF), lambda i: (0, 0)),
                pl.BlockSpec((1, FF), lambda i: (0, 0)),
                pl.BlockSpec((FF, D), lambda i: (0, 0)),
                pl.BlockSpec((1, D), lambda i: (0, 0))]
    if final_ln:
        args += [final_ln_params[0], final_ln_params[1]]
        in_specs += [pl.BlockSpec((1, D), lambda i: (0, 0)),
                     pl.BlockSpec((1, D), lambda i: (0, 0))]
    return pl.pallas_call(
        partial(_ffn_sublayer_kernel, final_ln=final_ln),
        out_shape=jax.ShapeDtypeStruct((M, D), x2d.dtype),
        grid=(M // bm,),
        in_specs=in_specs,
        out_specs=pl.BlockSpec((bm, D), lambda i: (i, 0)),
        compiler_params=_compiler_params(),
    )(*args)


# --------------------------------- model --------------------------------------

def transformer_decoder(x, mem, params, num_heads):
    # x: (T, B, D) f32, mem: (S, B, D) f32.  Inference (dropout = identity).
    T, B, D = x.shape
    S = mem.shape[0]
    S_pad = ((S + 7) // 8) * 8                   # sublane-align encoder length
    x_b = jnp.transpose(x, (1, 0, 2))                            # (B, T, D) f32
    mem_b = jnp.transpose(mem, (1, 0, 2)).astype(jnp.bfloat16)   # (B, S, D) bf16
    if S_pad != S:
        mem_b = jnp.pad(mem_b, ((0, 0), (0, S_pad - S), (0, 0)))

    n_layers = len(params["layers"])
    for li, lp in enumerate(params["layers"]):
        x_b = self_attn_sublayer(x_b, lp["self_attn"], num_heads)
        x_b = cross_attn_sublayer(x_b, mem_b, lp["enc_attn"], num_heads, s_valid=S)
        fl = (params["ln_g"], params["ln_b"]) if li == n_layers - 1 else None
        x2d = ffn_sublayer(x_b.reshape(B * T, D), lp, final_ln_params=fl)
        x_b = x2d.reshape(B, T, D)
    return jnp.transpose(x_b, (1, 0, 2))


# ------------------------------ params init -----------------------------------

def init_params(key, dim, ff_dim, num_head, num_layer):
    # Attention projection weights stored in torch (out, in) orientation bf16;
    # the q scale (head_dim**-0.5) is folded into wq/bq; wq|wk|wv fused.
    # O-proj / FFN weights stored (in, out).
    std = 0.02
    scale = (dim // num_head) ** -0.5
    wdt = jnp.bfloat16

    def dense(k, shape):
        return jax.random.normal(k, shape, jnp.float32) * std

    layers = []
    for _ in range(num_layer):
        key, k1, k2, k3, k4, k5, k6, k7, k8, k9, k10 = jax.random.split(key, 11)
        wqkv = jnp.concatenate([dense(k1, (dim, dim)) * scale,      # q (pre-scaled)
                                dense(k2, (dim, dim)),              # k
                                dense(k3, (dim, dim))], axis=0)     # v -> (3D, D)
        self_attn = {
            "ln_g": jnp.ones((1, dim), jnp.float32),
            "ln_b": jnp.zeros((1, dim), jnp.float32),
            "wqkv": wqkv.astype(wdt),
            "bqkv": jnp.zeros((3 * dim, 1), jnp.float32),   # q rows pre-scaled (==0)
            "wo": dense(k4, (dim, dim)).astype(wdt),        # (D_in, D_out)
            "bo": jnp.zeros((1, dim), jnp.float32),
        }
        enc_attn = {
            "ln_g": jnp.ones((1, dim), jnp.float32),
            "ln_b": jnp.zeros((1, dim), jnp.float32),
            "wq": (dense(k5, (dim, dim)) * scale).astype(wdt),          # (D, D)
            "bq": jnp.zeros((dim, 1), jnp.float32),
            "wkv": jnp.concatenate([dense(k6, (dim, dim)),
                                    dense(k7, (dim, dim))], axis=0).astype(wdt),
            "bkv": jnp.zeros((2 * dim, 1), jnp.float32),
            "wo": dense(k8, (dim, dim)).astype(wdt),
            "bo": jnp.zeros((1, dim), jnp.float32),
        }
        layers.append({
            "self_attn": self_attn,
            "enc_attn": enc_attn,
            "ln3_g": jnp.ones((1, dim), jnp.float32),
            "ln3_b": jnp.zeros((1, dim), jnp.float32),
            "w1": dense(k9, (dim, ff_dim)).astype(wdt),
            "b1": jnp.zeros((1, ff_dim), jnp.float32),
            "w2": dense(k10, (ff_dim, dim)).astype(wdt),
            "b2": jnp.zeros((1, dim), jnp.float32),
        })
    return {
        "layers": layers,
        "ln_g": jnp.ones((1, dim), jnp.float32),
        "ln_b": jnp.zeros((1, dim), jnp.float32),
    }


# --------------------------- pure-JAX reference --------------------------------

def _reference_forward(x, mem, params, num_heads):
    T, B, D = x.shape
    H = num_heads
    Dh = D // H
    xb = jnp.transpose(x, (1, 0, 2)).astype(jnp.float32)        # (B, T, D)
    memb = jnp.transpose(mem, (1, 0, 2)).astype(jnp.bfloat16)   # (B, S, D)

    def ln(z, g, b):
        mu = jnp.mean(z, axis=-1, keepdims=True)
        zc = z - mu
        var = jnp.mean(zc * zc, axis=-1, keepdims=True)
        return zc * jax.lax.rsqrt(var + EPS) * g + b

    def attend(q, k, v, wo, bo):
        Bq = q.shape[0]
        qh = q.reshape(Bq, -1, H, Dh).astype(jnp.bfloat16)
        kh = k.reshape(Bq, -1, H, Dh).astype(jnp.bfloat16)
        vh = v.reshape(Bq, -1, H, Dh).astype(jnp.bfloat16)
        s = jnp.einsum('bqhd,bkhd->bhqk', qh, kh,
                       preferred_element_type=jnp.float32)
        p = jax.nn.softmax(s, axis=-1)
        o = jnp.einsum('bhqk,bkhd->bqhd', p.astype(jnp.bfloat16), vh,
                       preferred_element_type=jnp.float32).reshape(Bq, -1, D)
        return jnp.einsum('btd,de->bte', o.astype(jnp.bfloat16), wo,
                          preferred_element_type=jnp.float32) + bo

    for lp in params["layers"]:
        sa = lp["self_attn"]
        h = ln(xb, sa["ln_g"], sa["ln_b"])
        qkv = jnp.einsum('btd,nd->btn', h.astype(jnp.bfloat16), sa["wqkv"],
                         preferred_element_type=jnp.float32) + sa["bqkv"][:, 0]
        xb = xb + attend(qkv[..., :D], qkv[..., D:2 * D], qkv[..., 2 * D:],
                         sa["wo"], sa["bo"])

        ca = lp["enc_attn"]
        h = ln(xb, ca["ln_g"], ca["ln_b"])
        q = jnp.einsum('btd,nd->btn', h.astype(jnp.bfloat16), ca["wq"],
                       preferred_element_type=jnp.float32) + ca["bq"][:, 0]
        kv = jnp.einsum('bsd,nd->bsn', memb, ca["wkv"],
                        preferred_element_type=jnp.float32) + ca["bkv"][:, 0]
        xb = xb + attend(q, kv[..., :D], kv[..., D:], ca["wo"], ca["bo"])

        h = ln(xb, lp["ln3_g"], lp["ln3_b"])
        h1 = jnp.maximum(jnp.einsum('btd,df->btf', h.astype(jnp.bfloat16), lp["w1"],
                                    preferred_element_type=jnp.float32) + lp["b1"], 0.0)
        xb = xb + jnp.einsum('btf,fd->btd', h1.astype(jnp.bfloat16), lp["w2"],
                             preferred_element_type=jnp.float32) + lp["b2"]

    xb = ln(xb, params["ln_g"], params["ln_b"])
    return jnp.transpose(xb, (1, 0, 2))


# --------------------------------- main ----------------------------------------

if __name__ == "__main__":
    dim, ff_dim, num_head, num_layer = 32, 64, 4, 2
    T, S, B = 8, 10, 2   # target length, memory length, batch

    key = jax.random.PRNGKey(0)
    k_x, k_mem, k_p = jax.random.split(key, 3)
    x = jax.random.normal(k_x, (T, B, dim), jnp.float32)      # (T, B, D)
    mem = jax.random.normal(k_mem, (S, B, dim), jnp.float32)  # (S, B, D)
    params = init_params(k_p, dim, ff_dim, num_head, num_layer)

    fwd = jax.jit(partial(transformer_decoder, num_heads=num_head))
    out = fwd(x, mem, params)
    jax.block_until_ready(out)
    assert out.shape == (T, B, dim) and bool(jnp.all(jnp.isfinite(out)))

    ref = _reference_forward(x, mem, params, num_head)
    max_err = float(jnp.max(jnp.abs(out - ref)))
    assert max_err < 5e-2, f"mismatch vs pure-JAX reference: {max_err}"
    print("KERNEL_OK")
</pallas_src>

<mosaic_0001>
module attributes {stable_mosaic.version = 11 : i64} {
  func.func @_self_attn_sublayer_kernel(%arg0: i32, %arg1: memref<1x8x32xf32, #tpu.memory_space<vmem>>, %arg2: memref<1x32xf32, #tpu.memory_space<vmem>>, %arg3: memref<1x32xf32, #tpu.memory_space<vmem>>, %arg4: memref<96x32xbf16, #tpu.memory_space<vmem>>, %arg5: memref<96x1xf32, #tpu.memory_space<vmem>>, %arg6: memref<32x32xbf16, #tpu.memory_space<vmem>>, %arg7: memref<1x32xf32, #tpu.memory_space<vmem>>, %arg8: memref<1x8x32xf32, #tpu.memory_space<vmem>>) attributes {dimension_semantics = [#tpu.dimension_semantics<parallel>], iteration_bounds = array<i64: 2>, scalar_prefetch = 0 : i64, scratch_operands = 0 : i64, tpu.core_type = #tpu.core_type<tc>, window_params = [{transform_indices = @transform_0, window_bounds = array<i64: 1, 8, 32>}, {pipeline_mode = #tpu.pipeline_mode<synchronous>, transform_indices = @transform_1, window_bounds = array<i64: 1, 32>}, {pipeline_mode = #tpu.pipeline_mode<synchronous>, transform_indices = @transform_2, window_bounds = array<i64: 1, 32>}, {pipeline_mode = #tpu.pipeline_mode<synchronous>, transform_indices = @transform_3, window_bounds = array<i64: 96, 32>}, {pipeline_mode = #tpu.pipeline_mode<synchronous>, transform_indices = @transform_4, window_bounds = array<i64: 96, 1>}, {pipeline_mode = #tpu.pipeline_mode<synchronous>, transform_indices = @transform_5, window_bounds = array<i64: 32, 32>}, {pipeline_mode = #tpu.pipeline_mode<synchronous>, transform_indices = @transform_6, window_bounds = array<i64: 1, 32>}, {transform_indices = @transform_7, window_bounds = array<i64: 1, 8, 32>}]} {
    %c0 = arith.constant 0 : index
    %c0_0 = arith.constant 0 : index
    %c0_1 = arith.constant 0 : index
    %0 = vector.load %arg1[%c0, %c0_0, %c0_1] : memref<1x8x32xf32, #tpu.memory_space<vmem>>, vector<1x8x32xf32>
    %1 = vector.shape_cast %0 : vector<1x8x32xf32> to vector<8x32xf32>
    %c0_2 = arith.constant 0 : index
    %c0_3 = arith.constant 0 : index
    %2 = vector.load %arg2[%c0_2, %c0_3] : memref<1x32xf32, #tpu.memory_space<vmem>>, vector<1x32xf32>
    %c0_4 = arith.constant 0 : index
    %c0_5 = arith.constant 0 : index
    %3 = vector.load %arg3[%c0_4, %c0_5] : memref<1x32xf32, #tpu.memory_space<vmem>>, vector<1x32xf32>
    %cst = arith.constant dense<0.000000e+00> : vector<8xf32>
    %4 = vector.multi_reduction <add>, %1, %cst [1] : vector<8x32xf32> to vector<8xf32>
    %5 = vector.shape_cast %4 : vector<8xf32> to vector<8x1xf32>
    %cst_6 = arith.constant 3.200000e+01 : f32
    %6 = vector.broadcast %cst_6 : f32 to vector<8x1xf32>
    %7 = arith.divf %5, %6 : vector<8x1xf32>
    %8 = vector.broadcast %7 : vector<8x1xf32> to vector<8x32xf32>
    %9 = arith.subf %1, %8 : vector<8x32xf32>
    %10 = arith.mulf %9, %9 : vector<8x32xf32>
    %cst_7 = arith.constant dense<0.000000e+00> : vector<8xf32>
    %11 = vector.multi_reduction <add>, %10, %cst_7 [1] : vector<8x32xf32> to vector<8xf32>
    %12 = vector.shape_cast %11 : vector<8xf32> to vector<8x1xf32>
    %cst_8 = arith.constant 3.200000e+01 : f32
    %13 = vector.broadcast %cst_8 : f32 to vector<8x1xf32>
    %14 = arith.divf %12, %13 : vector<8x1xf32>
    %cst_9 = arith.constant 9.99999974E-6 : f32
    %15 = vector.broadcast %cst_9 : f32 to vector<8x1xf32>
    %16 = arith.addf %14, %15 : vector<8x1xf32>
    %17 = math.rsqrt %16 : vector<8x1xf32>
    %18 = vector.broadcast %17 : vector<8x1xf32> to vector<8x32xf32>
    %19 = arith.mulf %9, %18 : vector<8x32xf32>
    %20 = vector.broadcast %2 : vector<1x32xf32> to vector<8x32xf32>
    %21 = arith.mulf %19, %20 : vector<8x32xf32>
    %22 = vector.broadcast %3 : vector<1x32xf32> to vector<8x32xf32>
    %23 = arith.addf %21, %22 : vector<8x32xf32>
    %c0_10 = arith.constant 0 : index
    %c0_11 = arith.constant 0 : index
    %24 = vector.load %arg4[%c0_10, %c0_11] : memref<96x32xbf16, #tpu.memory_space<vmem>>, vector<96x32xbf16>
    %25 = arith.truncf %23 : vector<8x32xf32> to vector<8x32xbf16>
    %cst_12 = arith.constant dense<0.000000e+00> : vector<96x8xf32>
    %26 = tpu.matmul %24, %25, %cst_12 {dimension_numbers = #tpu.dot_dimension_numbers<[1], [1], [0], [0], [0, 0, 1, 0], [], []>} : vector<96x32xbf16>, vector<8x32xbf16>, vector<96x8xf32> -> vector<96x8xf32>
    %c0_13 = arith.constant 0 : index
    %c0_14 = arith.constant 0 : index
    %27 = vector.load %arg5[%c0_13, %c0_14] : memref<96x1xf32, #tpu.memory_space<vmem>>, vector<96x1xf32>
    %28 = vector.broadcast %27 : vector<96x1xf32> to vector<96x8xf32>
    %29 = arith.addf %26, %28 : vector<96x8xf32>
    %30 = vector.extract_strided_slice %29 {offsets = [0, 0], sizes = [32, 8], strides = [1, 1]} : vector<96x8xf32> to vector<32x8xf32>
    %31 = vector.extract_strided_slice %29 {offsets = [32, 0], sizes = [32, 8], strides = [1, 1]} : vector<96x8xf32> to vector<32x8xf32>
    %32 = vector.extract_strided_slice %29 {offsets = [64, 0], sizes = [32, 8], strides = [1, 1]} : vector<96x8xf32> to vector<32x8xf32>
    %cst_15 = arith.constant 0.000000e+00 : f32
    %33 = vector.broadcast %cst_15 : f32 to vector<8x32xf32>
    %34 = vector.extract_strided_slice %30 {offsets = [0, 0], sizes = [8, 8], strides = [1, 1]} : vector<32x8xf32> to vector<8x8xf32>
    %35 = arith.truncf %34 : vector<8x8xf32> to vector<8x8xbf16>
    %36 = vector.extract_strided_slice %31 {offsets = [0, 0], sizes = [8, 8], strides = [1, 1]} : vector<32x8xf32> to vector<8x8xf32>
    %37 = arith.truncf %36 : vector<8x8xf32> to vector<8x8xbf16>
    %38 = vector.extract_strided_slice %32 {offsets = [0, 0], sizes = [8, 8], strides = [1, 1]} : vector<32x8xf32> to vector<8x8xf32>
    %39 = arith.truncf %38 : vector<8x8xf32> to vector<8x8xbf16>
    %cst_16 = arith.constant dense<0.000000e+00> : vector<8x8xf32>
    %40 = tpu.matmul %35, %37, %cst_16 {dimension_numbers = #tpu.dot_dimension_numbers<[0], [0], [1], [1], [0, 1, 1, 1], [], []>} : vector<8x8xbf16>, vector<8x8xbf16>, vector<8x8xf32> -> vector<8x8xf32>
    %cst_17 = arith.constant dense<0xFF800000> : vector<8xf32>
    %41 = vector.multi_reduction <maximumf>, %40, %cst_17 [1] : vector<8x8xf32> to vector<8xf32>
    %42 = vector.shape_cast %41 : vector<8xf32> to vector<8x1xf32>
    %43 = vector.broadcast %42 : vector<8x1xf32> to vector<8x8xf32>
    %44 = arith.subf %40, %43 : vector<8x8xf32>
    %45 = math.exp %44 : vector<8x8xf32>
    %cst_18 = arith.constant dense<0.000000e+00> : vector<8xf32>
    %46 = vector.multi_reduction <add>, %45, %cst_18 [1] : vector<8x8xf32> to vector<8xf32>
    %47 = vector.shape_cast %46 : vector<8xf32> to vector<8x1xf32>
    %48 = tpu.reciprocal %47 {approx = true} : vector<8x1xf32> -> vector<8x1xf32>
    %49 = vector.broadcast %48 : vector<8x1xf32> to vector<8x8xf32>
    %50 = arith.mulf %45, %49 : vector<8x8xf32>
    %51 = arith.truncf %50 : vector<8x8xf32> to vector<8x8xbf16>
    %cst_19 = arith.constant dense<0.000000e+00> : vector<8x8xf32>
    %52 = tpu.matmul %51, %39, %cst_19 {dimension_numbers = #tpu.dot_dimension_numbers<[1], [1], [0], [0], [0, 0, 1, 0], [], []>} : vector<8x8xbf16>, vector<8x8xbf16>, vector<8x8xf32> -> vector<8x8xf32>
    %53 = arith.truncf %52 : vector<8x8xf32> to vector<8x8xbf16>
    %c0_20 = arith.constant 0 : index
    %c0_21 = arith.constant 0 : index
    %54 = vector.load %arg6[%c0_20, %c0_21] : memref<32x32xbf16, #tpu.memory_space<vmem>>, vector<8x32xbf16>
    %cst_22 = arith.constant dense<0.000000e+00> : vector<8x32xf32>
    %55 = tpu.matmul %53, %54, %cst_22 {dimension_numbers = #tpu.dot_dimension_numbers<[1], [0], [0], [1], [0, 0, 1, 1], [], []>} : vector<8x8xbf16>, vector<8x32xbf16>, vector<8x32xf32> -> vector<8x32xf32>
    %56 = arith.addf %33, %55 : vector<8x32xf32>
    %57 = vector.extract_strided_slice %30 {offsets = [8, 0], sizes = [8, 8], strides = [1, 1]} : vector<32x8xf32> to vector<8x8xf32>
    %58 = arith.truncf %57 : vector<8x8xf32> to vector<8x8xbf16>
    %59 = vector.extract_strided_slice %31 {offsets = [8, 0], sizes = [8, 8], strides = [1, 1]} : vector<32x8xf32> to vector<8x8xf32>
    %60 = arith.truncf %59 : vector<8x8xf32> to vector<8x8xbf16>
    %61 = vector.extract_strided_slice %32 {offsets = [8, 0], sizes = [8, 8], strides = [1, 1]} : vector<32x8xf32> to vector<8x8xf32>
    %62 = arith.truncf %61 : vector<8x8xf32> to vector<8x8xbf16>
    %cst_23 = arith.constant dense<0.000000e+00> : vector<8x8xf32>
    %63 = tpu.matmul %58, %60, %cst_23 {dimension_numbers = #tpu.dot_dimension_numbers<[0], [0], [1], [1], [0, 1, 1, 1], [], []>} : vector<8x8xbf16>, vector<8x8xbf16>, vector<8x8xf32> -> vector<8x8xf32>
    %cst_24 = arith.constant dense<0xFF800000> : vector<8xf32>
    %64 = vector.multi_reduction <maximumf>, %63, %cst_24 [1] : vector<8x8xf32> to vector<8xf32>
    %65 = vector.shape_cast %64 : vector<8xf32> to vector<8x1xf32>
    %66 = vector.broadcast %65 : vector<8x1xf32> to vector<8x8xf32>
    %67 = arith.subf %63, %66 : vector<8x8xf32>
    %68 = math.exp %67 : vector<8x8xf32>
    %cst_25 = arith.constant dense<0.000000e+00> : vector<8xf32>
    %69 = vector.multi_reduction <add>, %68, %cst_25 [1] : vector<8x8xf32> to vector<8xf32>
    %70 = vector.shape_cast %69 : vector<8xf32> to vector<8x1xf32>
    %71 = tpu.reciprocal %70 {approx = true} : vector<8x1xf32> -> vector<8x1xf32>
    %72 = vector.broadcast %71 : vector<8x1xf32> to vector<8x8xf32>
    %73 = arith.mulf %68, %72 : vector<8x8xf32>
    %74 = arith.truncf %73 : vector<8x8xf32> to vector<8x8xbf16>
    %cst_26 = arith.constant dense<0.000000e+00> : vector<8x8xf32>
    %75 = tpu.matmul %74, %62, %cst_26 {dimension_numbers = #tpu.dot_dimension_numbers<[1], [1], [0], [0], [0, 0, 1, 0], [], []>} : vector<8x8xbf16>, vector<8x8xbf16>, vector<8x8xf32> -> vector<8x8xf32>
    %76 = arith.truncf %75 : vector<8x8xf32> to vector<8x8xbf16>
    %c8 = arith.constant 8 : index
    %c0_27 = arith.constant 0 : index
    %77 = vector.load %arg6[%c8, %c0_27] : memref<32x32xbf16, #tpu.memory_space<vmem>>, vector<8x32xbf16>
    %cst_28 = arith.constant dense<0.000000e+00> : vector<8x32xf32>
    %78 = tpu.matmul %76, %77, %cst_28 {dimension_numbers = #tpu.dot_dimension_numbers<[1], [0], [0], [1], [0, 0, 1, 1], [], []>} : vector<8x8xbf16>, vector<8x32xbf16>, vector<8x32xf32> -> vector<8x32xf32>
    %79 = arith.addf %56, %78 : vector<8x32xf32>
    %80 = vector.extract_strided_slice %30 {offsets = [16, 0], sizes = [8, 8], strides = [1, 1]} : vector<32x8xf32> to vector<8x8xf32>
    %81 = arith.truncf %80 : vector<8x8xf32> to vector<8x8xbf16>
    %82 = vector.extract_strided_slice %31 {offsets = [16, 0], sizes = [8, 8], strides = [1, 1]} : vector<32x8xf32> to vector<8x8xf32>
    %83 = arith.truncf %82 : vector<8x8xf32> to vector<8x8xbf16>
    %84 = vector.extract_strided_slice %32 {offsets = [16, 0], sizes = [8, 8], strides = [1, 1]} : vector<32x8xf32> to vector<8x8xf32>
    %85 = arith.truncf %84 : vector<8x8xf32> to vector<8x8xbf16>
    %cst_29 = arith.constant dense<0.000000e+00> : vector<8x8xf32>
    %86 = tpu.matmul %81, %83, %cst_29 {dimension_numbers = #tpu.dot_dimension_numbers<[0], [0], [1], [1], [0, 1, 1, 1], [], []>} : vector<8x8xbf16>, vector<8x8xbf16>, vector<8x8xf32> -> vector<8x8xf32>
    %cst_30 = arith.constant dense<0xFF800000> : vector<8xf32>
    %87 = vector.multi_reduction <maximumf>, %86, %cst_30 [1] : vector<8x8xf32> to vector<8xf32>
    %88 = vector.shape_cast %87 : vector<8xf32> to vector<8x1xf32>
    %89 = vector.broadcast %88 : vector<8x1xf32> to vector<8x8xf32>
    %90 = arith.subf %86, %89 : vector<8x8xf32>
    %91 = math.exp %90 : vector<8x8xf32>
    %cst_31 = arith.constant dense<0.000000e+00> : vector<8xf32>
    %92 = vector.multi_reduction <add>, %91, %cst_31 [1] : vector<8x8xf32> to vector<8xf32>
    %93 = vector.shape_cast %92 : vector<8xf32> to vector<8x1xf32>
    %94 = tpu.reciprocal %93 {approx = true} : vector<8x1xf32> -> vector<8x1xf32>
    %95 = vector.broadcast %94 : vector<8x1xf32> to vector<8x8xf32>
    %96 = arith.mulf %91, %95 : vector<8x8xf32>
    %97 = arith.truncf %96 : vector<8x8xf32> to vector<8x8xbf16>
    %cst_32 = arith.constant dense<0.000000e+00> : vector<8x8xf32>
    %98 = tpu.matmul %97, %85, %cst_32 {dimension_numbers = #tpu.dot_dimension_numbers<[1], [1], [0], [0], [0, 0, 1, 0], [], []>} : vector<8x8xbf16>, vector<8x8xbf16>, vector<8x8xf32> -> vector<8x8xf32>
    %99 = arith.truncf %98 : vector<8x8xf32> to vector<8x8xbf16>
    %c16 = arith.constant 16 : index
    %c0_33 = arith.constant 0 : index
    %100 = vector.load %arg6[%c16, %c0_33] : memref<32x32xbf16, #tpu.memory_space<vmem>>, vector<8x32xbf16>
    %cst_34 = arith.constant dense<0.000000e+00> : vector<8x32xf32>
    %101 = tpu.matmul %99, %100, %cst_34 {dimension_numbers = #tpu.dot_dimension_numbers<[1], [0], [0], [1], [0, 0, 1, 1], [], []>} : vector<8x8xbf16>, vector<8x32xbf16>, vector<8x32xf32> -> vector<8x32xf32>
    %102 = arith.addf %79, %101 : vector<8x32xf32>
    %103 = vector.extract_strided_slice %30 {offsets = [24, 0], sizes = [8, 8], strides = [1, 1]} : vector<32x8xf32> to vector<8x8xf32>
    %104 = arith.truncf %103 : vector<8x8xf32> to vector<8x8xbf16>
    %105 = vector.extract_strided_slice %31 {offsets = [24, 0], sizes = [8, 8], strides = [1, 1]} : vector<32x8xf32> to vector<8x8xf32>
    %106 = arith.truncf %105 : vector<8x8xf32> to vector<8x8xbf16>
    %107 = vector.extract_strided_slice %32 {offsets = [24, 0], sizes = [8, 8], strides = [1, 1]} : vector<32x8xf32> to vector<8x8xf32>
    %108 = arith.truncf %107 : vector<8x8xf32> to vector<8x8xbf16>
    %cst_35 = arith.constant dense<0.000000e+00> : vector<8x8xf32>
    %109 = tpu.matmul %104, %106, %cst_35 {dimension_numbers = #tpu.dot_dimension_numbers<[0], [0], [1], [1], [0, 1, 1, 1], [], []>} : vector<8x8xbf16>, vector<8x8xbf16>, vector<8x8xf32> -> vector<8x8xf32>
    %cst_36 = arith.constant dense<0xFF800000> : vector<8xf32>
    %110 = vector.multi_reduction <maximumf>, %109, %cst_36 [1] : vector<8x8xf32> to vector<8xf32>
    %111 = vector.shape_cast %110 : vector<8xf32> to vector<8x1xf32>
    %112 = vector.broadcast %111 : vector<8x1xf32> to vector<8x8xf32>
    %113 = arith.subf %109, %112 : vector<8x8xf32>
    %114 = math.exp %113 : vector<8x8xf32>
    %cst_37 = arith.constant dense<0.000000e+00> : vector<8xf32>
    %115 = vector.multi_reduction <add>, %114, %cst_37 [1] : vector<8x8xf32> to vector<8xf32>
    %116 = vector.shape_cast %115 : vector<8xf32> to vector<8x1xf32>
    %117 = tpu.reciprocal %116 {approx = true} : vector<8x1xf32> -> vector<8x1xf32>
    %118 = vector.broadcast %117 : vector<8x1xf32> to vector<8x8xf32>
    %119 = arith.mulf %114, %118 : vector<8x8xf32>
    %120 = arith.truncf %119 : vector<8x8xf32> to vector<8x8xbf16>
    %cst_38 = arith.constant dense<0.000000e+00> : vector<8x8xf32>
    %121 = tpu.matmul %120, %108, %cst_38 {dimension_numbers = #tpu.dot_dimension_numbers<[1], [1], [0], [0], [0, 0, 1, 0], [], []>} : vector<8x8xbf16>, vector<8x8xbf16>, vector<8x8xf32> -> vector<8x8xf32>
    %122 = arith.truncf %121 : vector<8x8xf32> to vector<8x8xbf16>
    %c24 = arith.constant 24 : index
    %c0_39 = arith.constant 0 : index
    %123 = vector.load %arg6[%c24, %c0_39] : memref<32x32xbf16, #tpu.memory_space<vmem>>, vector<8x32xbf16>
    %cst_40 = arith.constant dense<0.000000e+00> : vector<8x32xf32>
    %124 = tpu.matmul %122, %123, %cst_40 {dimension_numbers = #tpu.dot_dimension_numbers<[1], [0], [0], [1], [0, 0, 1, 1], [], []>} : vector<8x8xbf16>, vector<8x32xbf16>, vector<8x32xf32> -> vector<8x32xf32>
    %125 = arith.addf %102, %124 : vector<8x32xf32>
    %126 = arith.addf %1, %125 : vector<8x32xf32>
    %c0_41 = arith.constant 0 : index
    %c0_42 = arith.constant 0 : index
    %127 = vector.load %arg7[%c0_41, %c0_42] : memref<1x32xf32, #tpu.memory_space<vmem>>, vector<1x32xf32>
    %128 = vector.broadcast %127 : vector<1x32xf32> to vector<8x32xf32>
    %129 = arith.addf %126, %128 : vector<8x32xf32>
    %c0_43 = arith.constant 0 : index
    %c0_44 = arith.constant 0 : index
    %c0_45 = arith.constant 0 : index
    %130 = vector.load %arg8[%c0_43, %c0_44, %c0_45] : memref<1x8x32xf32, #tpu.memory_space<vmem>>, vector<1x8x32xf32>
    %131 = vector.shape_cast %130 : vector<1x8x32xf32> to vector<8x32xf32>
    %132 = vector.shape_cast %129 : vector<8x32xf32> to vector<1x8x32xf32>
    tpu.vector_store %arg8[%c0_43, %c0_44, %c0_45], %132 {strides = array<i32>} : memref<1x8x32xf32, #tpu.memory_space<vmem>>, vector<1x8x32xf32>,
    return
  }
  func.func @transform_0(%arg0: i32) -> (i32, i32, i32) {
    %c0_i32 = arith.constant 0 : i32
    %c0_i32_0 = arith.constant 0 : i32
    %c0_i32_1 = arith.constant 0 : i32
    return %arg0, %c0_i32, %c0_i32_0 : i32, i32, i32
  }
  func.func @transform_1(%arg0: i32) -> (i32, i32) {
    %c0_i32 = arith.constant 0 : i32
    %c0_i32_0 = arith.constant 0 : i32
    %c0_i32_1 = arith.constant 0 : i32
    return %c0_i32, %c0_i32_0 : i32, i32
  }
  func.func @transform_2(%arg0: i32) -> (i32, i32) {
    %c0_i32 = arith.constant 0 : i32
    %c0_i32_0 = arith.constant 0 : i32
    %c0_i32_1 = arith.constant 0 : i32
    return %c0_i32, %c0_i32_0 : i32, i32
  }
  func.func @transform_3(%arg0: i32) -> (i32, i32) {
    %c0_i32 = arith.constant 0 : i32
    %c0_i32_0 = arith.constant 0 : i32
    %c0_i32_1 = arith.constant 0 : i32
    return %c0_i32, %c0_i32_0 : i32, i32
  }
  func.func @transform_4(%arg0: i32) -> (i32, i32) {
    %c0_i32 = arith.constant 0 : i32
    %c0_i32_0 = arith.constant 0 : i32
    %c0_i32_1 = arith.constant 0 : i32
    return %c0_i32, %c0_i32_0 : i32, i32
  }
  func.func @transform_5(%arg0: i32) -> (i32, i32) {
    %c0_i32 = arith.constant 0 : i32
    %c0_i32_0 = arith.constant 0 : i32
    %c0_i32_1 = arith.constant 0 : i32
    return %c0_i32, %c0_i32_0 : i32, i32
  }
  func.func @transform_6(%arg0: i32) -> (i32, i32) {
    %c0_i32 = arith.constant 0 : i32
    %c0_i32_0 = arith.constant 0 : i32
    %c0_i32_1 = arith.constant 0 : i32
    return %c0_i32, %c0_i32_0 : i32, i32
  }
  func.func @transform_7(%arg0: i32) -> (i32, i32, i32) {
    %c0_i32 = arith.constant 0 : i32
    %c0_i32_0 = arith.constant 0 : i32
    %c0_i32_1 = arith.constant 0 : i32
    return %arg0, %c0_i32, %c0_i32_0 : i32, i32, i32
  }
}

module attributes {stable_mosaic.version = 11 : i64} {
  func.func @_ffn_sublayer_kernel(%arg0: i32, %arg1: memref<16x32xf32, #tpu.memory_space<vmem>>, %arg2: memref<1x32xf32, #tpu.memory_space<vmem>>, %arg3: memref<1x32xf32, #tpu.memory_space<vmem>>, %arg4: memref<32x64xbf16, #tpu.memory_space<vmem>>, %arg5: memref<1x64xf32, #tpu.memory_space<vmem>>, %arg6: memref<64x32xbf16, #tpu.memory_space<vmem>>, %arg7: memref<1x32xf32, #tpu.memory_space<vmem>>, %arg8: memref<16x32xf32, #tpu.memory_space<vmem>>) attributes {dimension_semantics = [#tpu.dimension_semantics<parallel>], iteration_bounds = array<i64: 1>, scalar_prefetch = 0 : i64, scratch_operands = 0 : i64, tpu.core_type = #tpu.core_type<tc>, window_params = [{transform_indices = @transform_0, window_bounds = array<i64: 16, 32>}, {pipeline_mode = #tpu.pipeline_mode<synchronous>, transform_indices = @transform_1, window_bounds = array<i64: 1, 32>}, {pipeline_mode = #tpu.pipeline_mode<synchronous>, transform_indices = @transform_2, window_bounds = array<i64: 1, 32>}, {pipeline_mode = #tpu.pipeline_mode<synchronous>, transform_indices = @transform_3, window_bounds = array<i64: 32, 64>}, {pipeline_mode = #tpu.pipeline_mode<synchronous>, transform_indices = @transform_4, window_bounds = array<i64: 1, 64>}, {pipeline_mode = #tpu.pipeline_mode<synchronous>, transform_indices = @transform_5, window_bounds = array<i64: 64, 32>}, {pipeline_mode = #tpu.pipeline_mode<synchronous>, transform_indices = @transform_6, window_bounds = array<i64: 1, 32>}, {transform_indices = @transform_7, window_bounds = array<i64: 16, 32>}]} {
    %c0 = arith.constant 0 : index
    %c0_0 = arith.constant 0 : index
    %0 = vector.load %arg1[%c0, %c0_0] : memref<16x32xf32, #tpu.memory_space<vmem>>, vector<16x32xf32>
    %c0_1 = arith.constant 0 : index
    %c0_2 = arith.constant 0 : index
    %1 = vector.load %arg2[%c0_1, %c0_2] : memref<1x32xf32, #tpu.memory_space<vmem>>, vector<1x32xf32>
    %c0_3 = arith.constant 0 : index
    %c0_4 = arith.constant 0 : index
    %2 = vector.load %arg3[%c0_3, %c0_4] : memref<1x32xf32, #tpu.memory_space<vmem>>, vector<1x32xf32>
    %cst = arith.constant dense<0.000000e+00> : vector<16xf32>
    %3 = vector.multi_reduction <add>, %0, %cst [1] : vector<16x32xf32> to vector<16xf32>
    %4 = vector.shape_cast %3 : vector<16xf32> to vector<16x1xf32>
    %cst_5 = arith.constant 3.200000e+01 : f32
    %5 = vector.broadcast %cst_5 : f32 to vector<16x1xf32>
    %6 = arith.divf %4, %5 : vector<16x1xf32>
    %7 = vector.broadcast %6 : vector<16x1xf32> to vector<16x32xf32>
    %8 = arith.subf %0, %7 : vector<16x32xf32>
    %9 = arith.mulf %8, %8 : vector<16x32xf32>
    %cst_6 = arith.constant dense<0.000000e+00> : vector<16xf32>
    %10 = vector.multi_reduction <add>, %9, %cst_6 [1] : vector<16x32xf32> to vector<16xf32>
    %11 = vector.shape_cast %10 : vector<16xf32> to vector<16x1xf32>
    %cst_7 = arith.constant 3.200000e+01 : f32
    %12 = vector.broadcast %cst_7 : f32 to vector<16x1xf32>
    %13 = arith.divf %11, %12 : vector<16x1xf32>
    %cst_8 = arith.constant 9.99999974E-6 : f32
    %14 = vector.broadcast %cst_8 : f32 to vector<16x1xf32>
    %15 = arith.addf %13, %14 : vector<16x1xf32>
    %16 = math.rsqrt %15 : vector<16x1xf32>
    %17 = vector.broadcast %16 : vector<16x1xf32> to vector<16x32xf32>
    %18 = arith.mulf %8, %17 : vector<16x32xf32>
    %19 = vector.broadcast %1 : vector<1x32xf32> to vector<16x32xf32>
    %20 = arith.mulf %18, %19 : vector<16x32xf32>
    %21 = vector.broadcast %2 : vector<1x32xf32> to vector<16x32xf32>
    %22 = arith.addf %20, %21 : vector<16x32xf32>
    %23 = arith.truncf %22 : vector<16x32xf32> to vector<16x32xbf16>
    %c0_9 = arith.constant 0 : index
    %c0_10 = arith.constant 0 : index
    %24 = vector.load %arg4[%c0_9, %c0_10] : memref<32x64xbf16, #tpu.memory_space<vmem>>, vector<32x64xbf16>
    %cst_11 = arith.constant dense<0.000000e+00> : vector<16x64xf32>
    %25 = tpu.matmul %23, %24, %cst_11 {dimension_numbers = #tpu.dot_dimension_numbers<[1], [0], [0], [1], [0, 0, 1, 1], [], []>} : vector<16x32xbf16>, vector<32x64xbf16>, vector<16x64xf32> -> vector<16x64xf32>
    %c0_12 = arith.constant 0 : index
    %c0_13 = arith.constant 0 : index
    %26 = vector.load %arg5[%c0_12, %c0_13] : memref<1x64xf32, #tpu.memory_space<vmem>>, vector<1x64xf32>
    %27 = vector.broadcast %26 : vector<1x64xf32> to vector<16x64xf32>
    %28 = arith.addf %25, %27 : vector<16x64xf32>
    %cst_14 = arith.constant 0.000000e+00 : f32
    %29 = vector.broadcast %cst_14 : f32 to vector<16x64xf32>
    %30 = arith.maximumf %28, %29 : vector<16x64xf32>
    %31 = arith.truncf %30 : vector<16x64xf32> to vector<16x64xbf16>
    %c0_15 = arith.constant 0 : index
    %c0_16 = arith.constant 0 : index
    %32 = vector.load %arg6[%c0_15, %c0_16] : memref<64x32xbf16, #tpu.memory_space<vmem>>, vector<64x32xbf16>
    %cst_17 = arith.constant dense<0.000000e+00> : vector<16x32xf32>
    %33 = tpu.matmul %31, %32, %cst_17 {dimension_numbers = #tpu.dot_dimension_numbers<[1], [0], [0], [1], [0, 0, 1, 1], [], []>} : vector<16x64xbf16>, vector<64x32xbf16>, vector<16x32xf32> -> vector<16x32xf32>
    %c0_18 = arith.constant 0 : index
    %c0_19 = arith.constant 0 : index
    %34 = vector.load %arg7[%c0_18, %c0_19] : memref<1x32xf32, #tpu.memory_space<vmem>>, vector<1x32xf32>
    %35 = vector.broadcast %34 : vector<1x32xf32> to vector<16x32xf32>
    %36 = arith.addf %33, %35 : vector<16x32xf32>
    %37 = arith.addf %0, %36 : vector<16x32xf32>
    %c0_20 = arith.constant 0 : index
    %c0_21 = arith.constant 0 : index
    %38 = vector.load %arg8[%c0_20, %c0_21] : memref<16x32xf32, #tpu.memory_space<vmem>>, vector<16x32xf32>
    tpu.vector_store %arg8[%c0_20, %c0_21], %37 {strides = array<i32>} : memref<16x32xf32, #tpu.memory_space<vmem>>, vector<16x32xf32>,
    return
  }
  func.func @transform_0(%arg0: i32) -> (i32, i32) {
    %c0_i32 = arith.constant 0 : i32
    %c0_i32_0 = arith.constant 0 : i32
    return %arg0, %c0_i32 : i32, i32
  }
  func.func @transform_1(%arg0: i32) -> (i32, i32) {
    %c0_i32 = arith.constant 0 : i32
    %c0_i32_0 = arith.constant 0 : i32
    %c0_i32_1 = arith.constant 0 : i32
    return %c0_i32, %c0_i32_0 : i32, i32
  }
  func.func @transform_2(%arg0: i32) -> (i32, i32) {
    %c0_i32 = arith.constant 0 : i32
    %c0_i32_0 = arith.constant 0 : i32
    %c0_i32_1 = arith.constant 0 : i32
    return %c0_i32, %c0_i32_0 : i32, i32
  }
  func.func @transform_3(%arg0: i32) -> (i32, i32) {
    %c0_i32 = arith.constant 0 : i32
    %c0_i32_0 = arith.constant 0 : i32
    %c0_i32_1 = arith.constant 0 : i32
    return %c0_i32, %c0_i32_0 : i32, i32
  }
  func.func @transform_4(%arg0: i32) -> (i32, i32) {
    %c0_i32 = arith.constant 0 : i32
    %c0_i32_0 = arith.constant 0 : i32
    %c0_i32_1 = arith.constant 0 : i32
    return %c0_i32, %c0_i32_0 : i32, i32
  }
  func.func @transform_5(%arg0: i32) -> (i32, i32) {
    %c0_i32 = arith.constant 0 : i32
    %c0_i32_0 = arith.constant 0 : i32
    %c0_i32_1 = arith.constant 0 : i32
    return %c0_i32, %c0_i32_0 : i32, i32
  }
  func.func @transform_6(%arg0: i32) -> (i32, i32) {
    %c0_i32 = arith.constant 0 : i32
    %c0_i32_0 = arith.constant 0 : i32
    %c0_i32_1 = arith.constant 0 : i32
    return %c0_i32, %c0_i32_0 : i32, i32
  }
  func.func @transform_7(%arg0: i32) -> (i32, i32) {
    %c0_i32 = arith.constant 0 : i32
    %c0_i32_0 = arith.constant 0 : i32
    return %arg0, %c0_i32 : i32, i32
  }
}

module attributes {stable_mosaic.version = 11 : i64} {
  func.func @_ffn_sublayer_kernel(%arg0: i32, %arg1: memref<16x32xf32, #tpu.memory_space<vmem>>, %arg2: memref<1x32xf32, #tpu.memory_space<vmem>>, %arg3: memref<1x32xf32, #tpu.memory_space<vmem>>, %arg4: memref<32x64xbf16, #tpu.memory_space<vmem>>, %arg5: memref<1x64xf32, #tpu.memory_space<vmem>>, %arg6: memref<64x32xbf16, #tpu.memory_space<vmem>>, %arg7: memref<1x32xf32, #tpu.memory_space<vmem>>, %arg8: memref<1x32xf32, #tpu.memory_space<vmem>>, %arg9: memref<1x32xf32, #tpu.memory_space<vmem>>, %arg10: memref<16x32xf32, #tpu.memory_space<vmem>>) attributes {dimension_semantics = [#tpu.dimension_semantics<parallel>], iteration_bounds = array<i64: 1>, scalar_prefetch = 0 : i64, scratch_operands = 0 : i64, tpu.core_type = #tpu.core_type<tc>, window_params = [{transform_indices = @transform_0, window_bounds = array<i64: 16, 32>}, {pipeline_mode = #tpu.pipeline_mode<synchronous>, transform_indices = @transform_1, window_bounds = array<i64: 1, 32>}, {pipeline_mode = #tpu.pipeline_mode<synchronous>, transform_indices = @transform_2, window_bounds = array<i64: 1, 32>}, {pipeline_mode = #tpu.pipeline_mode<synchronous>, transform_indices = @transform_3, window_bounds = array<i64: 32, 64>}, {pipeline_mode = #tpu.pipeline_mode<synchronous>, transform_indices = @transform_4, window_bounds = array<i64: 1, 64>}, {pipeline_mode = #tpu.pipeline_mode<synchronous>, transform_indices = @transform_5, window_bounds = array<i64: 64, 32>}, {pipeline_mode = #tpu.pipeline_mode<synchronous>, transform_indices = @transform_6, window_bounds = array<i64: 1, 32>}, {pipeline_mode = #tpu.pipeline_mode<synchronous>, transform_indices = @transform_7, window_bounds = array<i64: 1, 32>}, {pipeline_mode = #tpu.pipeline_mode<synchronous>, transform_indices = @transform_8, window_bounds = array<i64: 1, 32>}, {transform_indices = @transform_9, window_bounds = array<i64: 16, 32>}]} {
    %c0 = arith.constant 0 : index
    %c0_0 = arith.constant 0 : index
    %0 = vector.load %arg1[%c0, %c0_0] : memref<16x32xf32, #tpu.memory_space<vmem>>, vector<16x32xf32>
    %c0_1 = arith.constant 0 : index
    %c0_2 = arith.constant 0 : index
    %1 = vector.load %arg2[%c0_1, %c0_2] : memref<1x32xf32, #tpu.memory_space<vmem>>, vector<1x32xf32>
    %c0_3 = arith.constant 0 : index
    %c0_4 = arith.constant 0 : index
    %2 = vector.load %arg3[%c0_3, %c0_4] : memref<1x32xf32, #tpu.memory_space<vmem>>, vector<1x32xf32>
    %cst = arith.constant dense<0.000000e+00> : vector<16xf32>
    %3 = vector.multi_reduction <add>, %0, %cst [1] : vector<16x32xf32> to vector<16xf32>
    %4 = vector.shape_cast %3 : vector<16xf32> to vector<16x1xf32>
    %cst_5 = arith.constant 3.200000e+01 : f32
    %5 = vector.broadcast %cst_5 : f32 to vector<16x1xf32>
    %6 = arith.divf %4, %5 : vector<16x1xf32>
    %7 = vector.broadcast %6 : vector<16x1xf32> to vector<16x32xf32>
    %8 = arith.subf %0, %7 : vector<16x32xf32>
    %9 = arith.mulf %8, %8 : vector<16x32xf32>
    %cst_6 = arith.constant dense<0.000000e+00> : vector<16xf32>
    %10 = vector.multi_reduction <add>, %9, %cst_6 [1] : vector<16x32xf32> to vector<16xf32>
    %11 = vector.shape_cast %10 : vector<16xf32> to vector<16x1xf32>
    %cst_7 = arith.constant 3.200000e+01 : f32
    %12 = vector.broadcast %cst_7 : f32 to vector<16x1xf32>
    %13 = arith.divf %11, %12 : vector<16x1xf32>
    %cst_8 = arith.constant 9.99999974E-6 : f32
    %14 = vector.broadcast %cst_8 : f32 to vector<16x1xf32>
    %15 = arith.addf %13, %14 : vector<16x1xf32>
    %16 = math.rsqrt %15 : vector<16x1xf32>
    %17 = vector.broadcast %16 : vector<16x1xf32> to vector<16x32xf32>
    %18 = arith.mulf %8, %17 : vector<16x32xf32>
    %19 = vector.broadcast %1 : vector<1x32xf32> to vector<16x32xf32>
    %20 = arith.mulf %18, %19 : vector<16x32xf32>
    %21 = vector.broadcast %2 : vector<1x32xf32> to vector<16x32xf32>
    %22 = arith.addf %20, %21 : vector<16x32xf32>
    %23 = arith.truncf %22 : vector<16x32xf32> to vector<16x32xbf16>
    %c0_9 = arith.constant 0 : index
    %c0_10 = arith.constant 0 : index
    %24 = vector.load %arg4[%c0_9, %c0_10] : memref<32x64xbf16, #tpu.memory_space<vmem>>, vector<32x64xbf16>
    %cst_11 = arith.constant dense<0.000000e+00> : vector<16x64xf32>
    %25 = tpu.matmul %23, %24, %cst_11 {dimension_numbers = #tpu.dot_dimension_numbers<[1], [0], [0], [1], [0, 0, 1, 1], [], []>} : vector<16x32xbf16>, vector<32x64xbf16>, vector<16x64xf32> -> vector<16x64xf32>
    %c0_12 = arith.constant 0 : index
    %c0_13 = arith.constant 0 : index
    %26 = vector.load %arg5[%c0_12, %c0_13] : memref<1x64xf32, #tpu.memory_space<vmem>>, vector<1x64xf32>
    %27 = vector.broadcast %26 : vector<1x64xf32> to vector<16x64xf32>
    %28 = arith.addf %25, %27 : vector<16x64xf32>
    %cst_14 = arith.constant 0.000000e+00 : f32
    %29 = vector.broadcast %cst_14 : f32 to vector<16x64xf32>
    %30 = arith.maximumf %28, %29 : vector<16x64xf32>
    %31 = arith.truncf %30 : vector<16x64xf32> to vector<16x64xbf16>
    %c0_15 = arith.constant 0 : index
    %c0_16 = arith.constant 0 : index
    %32 = vector.load %arg6[%c0_15, %c0_16] : memref<64x32xbf16, #tpu.memory_space<vmem>>, vector<64x32xbf16>
    %cst_17 = arith.constant dense<0.000000e+00> : vector<16x32xf32>
    %33 = tpu.matmul %31, %32, %cst_17 {dimension_numbers = #tpu.dot_dimension_numbers<[1], [0], [0], [1], [0, 0, 1, 1], [], []>} : vector<16x64xbf16>, vector<64x32xbf16>, vector<16x32xf32> -> vector<16x32xf32>
    %c0_18 = arith.constant 0 : index
    %c0_19 = arith.constant 0 : index
    %34 = vector.load %arg7[%c0_18, %c0_19] : memref<1x32xf32, #tpu.memory_space<vmem>>, vector<1x32xf32>
    %35 = vector.broadcast %34 : vector<1x32xf32> to vector<16x32xf32>
    %36 = arith.addf %33, %35 : vector<16x32xf32>
    %37 = arith.addf %0, %36 : vector<16x32xf32>
    %c0_20 = arith.constant 0 : index
    %c0_21 = arith.constant 0 : index
    %38 = vector.load %arg8[%c0_20, %c0_21] : memref<1x32xf32, #tpu.memory_space<vmem>>, vector<1x32xf32>
    %c0_22 = arith.constant 0 : index
    %c0_23 = arith.constant 0 : index
    %39 = vector.load %arg9[%c0_22, %c0_23] : memref<1x32xf32, #tpu.memory_space<vmem>>, vector<1x32xf32>
    %cst_24 = arith.constant dense<0.000000e+00> : vector<16xf32>
    %40 = vector.multi_reduction <add>, %37, %cst_24 [1] : vector<16x32xf32> to vector<16xf32>
    %41 = vector.shape_cast %40 : vector<16xf32> to vector<16x1xf32>
    %cst_25 = arith.constant 3.200000e+01 : f32
    %42 = vector.broadcast %cst_25 : f32 to vector<16x1xf32>
    %43 = arith.divf %41, %42 : vector<16x1xf32>
    %44 = vector.broadcast %43 : vector<16x1xf32> to vector<16x32xf32>
    %45 = arith.subf %37, %44 : vector<16x32xf32>
    %46 = arith.mulf %45, %45 : vector<16x32xf32>
    %cst_26 = arith.constant dense<0.000000e+00> : vector<16xf32>
    %47 = vector.multi_reduction <add>, %46, %cst_26 [1] : vector<16x32xf32> to vector<16xf32>
    %48 = vector.shape_cast %47 : vector<16xf32> to vector<16x1xf32>
    %cst_27 = arith.constant 3.200000e+01 : f32
    %49 = vector.broadcast %cst_27 : f32 to vector<16x1xf32>
    %50 = arith.divf %48, %49 : vector<16x1xf32>
    %cst_28 = arith.constant 9.99999974E-6 : f32
    %51 = vector.broadcast %cst_28 : f32 to vector<16x1xf32>
    %52 = arith.addf %50, %51 : vector<16x1xf32>
    %53 = math.rsqrt %52 : vector<16x1xf32>
    %54 = vector.broadcast %53 : vector<16x1xf32> to vector<16x32xf32>
    %55 = arith.mulf %45, %54 : vector<16x32xf32>
    %56 = vector.broadcast %38 : vector<1x32xf32> to vector<16x32xf32>
    %57 = arith.mulf %55, %56 : vector<16x32xf32>
    %58 = vector.broadcast %39 : vector<1x32xf32> to vector<16x32xf32>
    %59 = arith.addf %57, %58 : vector<16x32xf32>
    %c0_29 = arith.constant 0 : index
    %c0_30 = arith.constant 0 : index
    %60 = vector.load %arg10[%c0_29, %c0_30] : memref<16x32xf32, #tpu.memory_space<vmem>>, vector<16x32xf32>
    tpu.vector_store %arg10[%c0_29, %c0_30], %59 {strides = array<i32>} : memref<16x32xf32, #tpu.memory_space<vmem>>, vector<16x32xf32>,
    return
  }
  func.func @transform_0(%arg0: i32) -> (i32, i32) {
    %c0_i32 = arith.constant 0 : i32
    %c0_i32_0 = arith.constant 0 : i32
    return %arg0, %c0_i32 : i32, i32
  }
  func.func @transform_1(%arg0: i32) -> (i32, i32) {
    %c0_i32 = arith.constant 0 : i32
    %c0_i32_0 = arith.constant 0 : i32
    %c0_i32_1 = arith.constant 0 : i32
    return %c0_i32, %c0_i32_0 : i32, i32
  }
  func.func @transform_2(%arg0: i32) -> (i32, i32) {
    %c0_i32 = arith.constant 0 : i32
    %c0_i32_0 = arith.constant 0 : i32
    %c0_i32_1 = arith.constant 0 : i32
    return %c0_i32, %c0_i32_0 : i32, i32
  }
  func.func @transform_3(%arg0: i32) -> (i32, i32) {
    %c0_i32 = arith.constant 0 : i32
    %c0_i32_0 = arith.constant 0 : i32
    %c0_i32_1 = arith.constant 0 : i32
    return %c0_i32, %c0_i32_0 : i32, i32
  }
  func.func @transform_4(%arg0: i32) -> (i32, i32) {
    %c0_i32 = arith.constant 0 : i32
    %c0_i32_0 = arith.constant 0 : i32
    %c0_i32_1 = arith.constant 0 : i32
    return %c0_i32, %c0_i32_0 : i32, i32
  }
  func.func @transform_5(%arg0: i32) -> (i32, i32) {
    %c0_i32 = arith.constant 0 : i32
    %c0_i32_0 = arith.constant 0 : i32
    %c0_i32_1 = arith.constant 0 : i32
    return %c0_i32, %c0_i32_0 : i32, i32
  }
  func.func @transform_6(%arg0: i32) -> (i32, i32) {
    %c0_i32 = arith.constant 0 : i32
    %c0_i32_0 = arith.constant 0 : i32
    %c0_i32_1 = arith.constant 0 : i32
    return %c0_i32, %c0_i32_0 : i32, i32
  }
  func.func @transform_7(%arg0: i32) -> (i32, i32) {
    %c0_i32 = arith.constant 0 : i32
    %c0_i32_0 = arith.constant 0 : i32
    %c0_i32_1 = arith.constant 0 : i32
    return %c0_i32, %c0_i32_0 : i32, i32
  }
  func.func @transform_8(%arg0: i32) -> (i32, i32) {
    %c0_i32 = arith.constant 0 : i32
    %c0_i32_0 = arith.constant 0 : i32
    %c0_i32_1 = arith.constant 0 : i32
    return %c0_i32, %c0_i32_0 : i32, i32
  }
  func.func @transform_9(%arg0: i32) -> (i32, i32) {
    %c0_i32 = arith.constant 0 : i32
    %c0_i32_0 = arith.constant 0 : i32
    return %arg0, %c0_i32 : i32, i32
  }
}

module attributes {stable_mosaic.version = 11 : i64} {
  func.func @_cross_attn_sublayer_kernel(%arg0: i32, %arg1: memref<1x8x32xf32, #tpu.memory_space<vmem>>, %arg2: memref<1x16x32xbf16, #tpu.memory_space<vmem>>, %arg3: memref<1x32xf32, #tpu.memory_space<vmem>>, %arg4: memref<1x32xf32, #tpu.memory_space<vmem>>, %arg5: memref<32x32xbf16, #tpu.memory_space<vmem>>, %arg6: memref<32x1xf32, #tpu.memory_space<vmem>>, %arg7: memref<64x32xbf16, #tpu.memory_space<vmem>>, %arg8: memref<64x1xf32, #tpu.memory_space<vmem>>, %arg9: memref<32x32xbf16, #tpu.memory_space<vmem>>, %arg10: memref<1x32xf32, #tpu.memory_space<vmem>>, %arg11: memref<1x8x32xf32, #tpu.memory_space<vmem>>) attributes {dimension_semantics = [#tpu.dimension_semantics<parallel>], iteration_bounds = array<i64: 2>, scalar_prefetch = 0 : i64, scratch_operands = 0 : i64, tpu.core_type = #tpu.core_type<tc>, window_params = [{transform_indices = @transform_0, window_bounds = array<i64: 1, 8, 32>}, {transform_indices = @transform_1, window_bounds = array<i64: 1, 16, 32>}, {pipeline_mode = #tpu.pipeline_mode<synchronous>, transform_indices = @transform_2, window_bounds = array<i64: 1, 32>}, {pipeline_mode = #tpu.pipeline_mode<synchronous>, transform_indices = @transform_3, window_bounds = array<i64: 1, 32>}, {pipeline_mode = #tpu.pipeline_mode<synchronous>, transform_indices = @transform_4, window_bounds = array<i64: 32, 32>}, {pipeline_mode = #tpu.pipeline_mode<synchronous>, transform_indices = @transform_5, window_bounds = array<i64: 32, 1>}, {pipeline_mode = #tpu.pipeline_mode<synchronous>, transform_indices = @transform_6, window_bounds = array<i64: 64, 32>}, {pipeline_mode = #tpu.pipeline_mode<synchronous>, transform_indices = @transform_7, window_bounds = array<i64: 64, 1>}, {pipeline_mode = #tpu.pipeline_mode<synchronous>, transform_indices = @transform_8, window_bounds = array<i64: 32, 32>}, {pipeline_mode = #tpu.pipeline_mode<synchronous>, transform_indices = @transform_9, window_bounds = array<i64: 1, 32>}, {transform_indices = @transform_10, window_bounds = array<i64: 1, 8, 32>}]} {
    %c0 = arith.constant 0 : index
    %c0_0 = arith.constant 0 : index
    %c0_1 = arith.constant 0 : index
    %0 = vector.load %arg1[%c0, %c0_0, %c0_1] : memref<1x8x32xf32, #tpu.memory_space<vmem>>, vector<1x8x32xf32>
    %1 = vector.shape_cast %0 : vector<1x8x32xf32> to vector<8x32xf32>
    %c0_2 = arith.constant 0 : index
    %c0_3 = arith.constant 0 : index
    %c0_4 = arith.constant 0 : index
    %2 = vector.load %arg2[%c0_2, %c0_3, %c0_4] : memref<1x16x32xbf16, #tpu.memory_space<vmem>>, vector<1x16x32xbf16>
    %3 = vector.shape_cast %2 : vector<1x16x32xbf16> to vector<16x32xbf16>
    %c0_5 = arith.constant 0 : index
    %c0_6 = arith.constant 0 : index
    %4 = vector.load %arg3[%c0_5, %c0_6] : memref<1x32xf32, #tpu.memory_space<vmem>>, vector<1x32xf32>
    %c0_7 = arith.constant 0 : index
    %c0_8 = arith.constant 0 : index
    %5 = vector.load %arg4[%c0_7, %c0_8] : memref<1x32xf32, #tpu.memory_space<vmem>>, vector<1x32xf32>
    %cst = arith.constant dense<0.000000e+00> : vector<8xf32>
    %6 = vector.multi_reduction <add>, %1, %cst [1] : vector<8x32xf32> to vector<8xf32>
    %7 = vector.shape_cast %6 : vector<8xf32> to vector<8x1xf32>
    %cst_9 = arith.constant 3.200000e+01 : f32
    %8 = vector.broadcast %cst_9 : f32 to vector<8x1xf32>
    %9 = arith.divf %7, %8 : vector<8x1xf32>
    %10 = vector.broadcast %9 : vector<8x1xf32> to vector<8x32xf32>
    %11 = arith.subf %1, %10 : vector<8x32xf32>
    %12 = arith.mulf %11, %11 : vector<8x32xf32>
    %cst_10 = arith.constant dense<0.000000e+00> : vector<8xf32>
    %13 = vector.multi_reduction <add>, %12, %cst_10 [1] : vector<8x32xf32> to vector<8xf32>
    %14 = vector.shape_cast %13 : vector<8xf32> to vector<8x1xf32>
    %cst_11 = arith.constant 3.200000e+01 : f32
    %15 = vector.broadcast %cst_11 : f32 to vector<8x1xf32>
    %16 = arith.divf %14, %15 : vector<8x1xf32>
    %cst_12 = arith.constant 9.99999974E-6 : f32
    %17 = vector.broadcast %cst_12 : f32 to vector<8x1xf32>
    %18 = arith.addf %16, %17 : vector<8x1xf32>
    %19 = math.rsqrt %18 : vector<8x1xf32>
    %20 = vector.broadcast %19 : vector<8x1xf32> to vector<8x32xf32>
    %21 = arith.mulf %11, %20 : vector<8x32xf32>
    %22 = vector.broadcast %4 : vector<1x32xf32> to vector<8x32xf32>
    %23 = arith.mulf %21, %22 : vector<8x32xf32>
    %24 = vector.broadcast %5 : vector<1x32xf32> to vector<8x32xf32>
    %25 = arith.addf %23, %24 : vector<8x32xf32>
    %c0_13 = arith.constant 0 : index
    %c0_14 = arith.constant 0 : index
    %26 = vector.load %arg5[%c0_13, %c0_14] : memref<32x32xbf16, #tpu.memory_space<vmem>>, vector<32x32xbf16>
    %27 = arith.truncf %25 : vector<8x32xf32> to vector<8x32xbf16>
    %cst_15 = arith.constant dense<0.000000e+00> : vector<32x8xf32>
    %28 = tpu.matmul %26, %27, %cst_15 {dimension_numbers = #tpu.dot_dimension_numbers<[1], [1], [0], [0], [0, 0, 1, 0], [], []>} : vector<32x32xbf16>, vector<8x32xbf16>, vector<32x8xf32> -> vector<32x8xf32>
    %c0_16 = arith.constant 0 : index
    %c0_17 = arith.constant 0 : index
    %29 = vector.load %arg6[%c0_16, %c0_17] : memref<32x1xf32, #tpu.memory_space<vmem>>, vector<32x1xf32>
    %30 = vector.broadcast %29 : vector<32x1xf32> to vector<32x8xf32>
    %31 = arith.addf %28, %30 : vector<32x8xf32>
    %c0_18 = arith.constant 0 : index
    %c0_19 = arith.constant 0 : index
    %32 = vector.load %arg7[%c0_18, %c0_19] : memref<64x32xbf16, #tpu.memory_space<vmem>>, vector<64x32xbf16>
    %cst_20 = arith.constant dense<0.000000e+00> : vector<64x16xf32>
    %33 = tpu.matmul %32, %3, %cst_20 {dimension_numbers = #tpu.dot_dimension_numbers<[1], [1], [0], [0], [0, 0, 1, 0], [], []>} : vector<64x32xbf16>, vector<16x32xbf16>, vector<64x16xf32> -> vector<64x16xf32>
    %c0_21 = arith.constant 0 : index
    %c0_22 = arith.constant 0 : index
    %34 = vector.load %arg8[%c0_21, %c0_22] : memref<64x1xf32, #tpu.memory_space<vmem>>, vector<64x1xf32>
    %35 = vector.broadcast %34 : vector<64x1xf32> to vector<64x16xf32>
    %36 = arith.addf %33, %35 : vector<64x16xf32>
    %37 = tpu.iota {dimensions = array<i32: 1>} : vector<8x16xi32>
    %c10_i32 = arith.constant 10 : i32
    %38 = vector.broadcast %c10_i32 : i32 to vector<8x16xi32>
    %39 = arith.cmpi slt, %37, %38 : vector<8x16xi32>
    %cst_23 = arith.constant 0.000000e+00 : f32
    %cst_24 = arith.constant -1.000000e+09 : f32
    %40 = vector.broadcast %cst_23 : f32 to vector<8x16xf32>
    %41 = vector.broadcast %cst_24 : f32 to vector<8x16xf32>
    %42 = arith.select %39, %40, %41 : vector<8x16xi1>, vector<8x16xf32>
    %43 = vector.extract_strided_slice %36 {offsets = [0, 0], sizes = [32, 16], strides = [1, 1]} : vector<64x16xf32> to vector<32x16xf32>
    %44 = vector.extract_strided_slice %36 {offsets = [32, 0], sizes = [32, 16], strides = [1, 1]} : vector<64x16xf32> to vector<32x16xf32>
    %cst_25 = arith.constant 0.000000e+00 : f32
    %45 = vector.broadcast %cst_25 : f32 to vector<8x32xf32>
    %46 = vector.extract_strided_slice %31 {offsets = [0, 0], sizes = [8, 8], strides = [1, 1]} : vector<32x8xf32> to vector<8x8xf32>
    %47 = arith.truncf %46 : vector<8x8xf32> to vector<8x8xbf16>
    %48 = vector.extract_strided_slice %43 {offsets = [0, 0], sizes = [8, 16], strides = [1, 1]} : vector<32x16xf32> to vector<8x16xf32>
    %49 = arith.truncf %48 : vector<8x16xf32> to vector<8x16xbf16>
    %50 = vector.extract_strided_slice %44 {offsets = [0, 0], sizes = [8, 16], strides = [1, 1]} : vector<32x16xf32> to vector<8x16xf32>
    %51 = arith.truncf %50 : vector<8x16xf32> to vector<8x16xbf16>
    %cst_26 = arith.constant dense<0.000000e+00> : vector<8x16xf32>
    %52 = tpu.matmul %47, %49, %cst_26 {dimension_numbers = #tpu.dot_dimension_numbers<[0], [0], [1], [1], [0, 1, 1, 1], [], []>} : vector<8x8xbf16>, vector<8x16xbf16>, vector<8x16xf32> -> vector<8x16xf32>
    %53 = arith.addf %52, %42 : vector<8x16xf32>
    %cst_27 = arith.constant dense<0xFF800000> : vector<8xf32>
    %54 = vector.multi_reduction <maximumf>, %53, %cst_27 [1] : vector<8x16xf32> to vector<8xf32>
    %55 = vector.shape_cast %54 : vector<8xf32> to vector<8x1xf32>
    %56 = vector.broadcast %55 : vector<8x1xf32> to vector<8x16xf32>
    %57 = arith.subf %53, %56 : vector<8x16xf32>
    %58 = math.exp %57 : vector<8x16xf32>
    %cst_28 = arith.constant dense<0.000000e+00> : vector<8xf32>
    %59 = vector.multi_reduction <add>, %58, %cst_28 [1] : vector<8x16xf32> to vector<8xf32>
    %60 = vector.shape_cast %59 : vector<8xf32> to vector<8x1xf32>
    %61 = tpu.reciprocal %60 {approx = true} : vector<8x1xf32> -> vector<8x1xf32>
    %62 = vector.broadcast %61 : vector<8x1xf32> to vector<8x16xf32>
    %63 = arith.mulf %58, %62 : vector<8x16xf32>
    %64 = arith.truncf %63 : vector<8x16xf32> to vector<8x16xbf16>
    %cst_29 = arith.constant dense<0.000000e+00> : vector<8x8xf32>
    %65 = tpu.matmul %64, %51, %cst_29 {dimension_numbers = #tpu.dot_dimension_numbers<[1], [1], [0], [0], [0, 0, 1, 0], [], []>} : vector<8x16xbf16>, vector<8x16xbf16>, vector<8x8xf32> -> vector<8x8xf32>
    %66 = arith.truncf %65 : vector<8x8xf32> to vector<8x8xbf16>
    %c0_30 = arith.constant 0 : index
    %c0_31 = arith.constant 0 : index
    %67 = vector.load %arg9[%c0_30, %c0_31] : memref<32x32xbf16, #tpu.memory_space<vmem>>, vector<8x32xbf16>
    %cst_32 = arith.constant dense<0.000000e+00> : vector<8x32xf32>
    %68 = tpu.matmul %66, %67, %cst_32 {dimension_numbers = #tpu.dot_dimension_numbers<[1], [0], [0], [1], [0, 0, 1, 1], [], []>} : vector<8x8xbf16>, vector<8x32xbf16>, vector<8x32xf32> -> vector<8x32xf32>
    %69 = arith.addf %45, %68 : vector<8x32xf32>
    %70 = vector.extract_strided_slice %31 {offsets = [8, 0], sizes = [8, 8], strides = [1, 1]} : vector<32x8xf32> to vector<8x8xf32>
    %71 = arith.truncf %70 : vector<8x8xf32> to vector<8x8xbf16>
    %72 = vector.extract_strided_slice %43 {offsets = [8, 0], sizes = [8, 16], strides = [1, 1]} : vector<32x16xf32> to vector<8x16xf32>
    %73 = arith.truncf %72 : vector<8x16xf32> to vector<8x16xbf16>
    %74 = vector.extract_strided_slice %44 {offsets = [8, 0], sizes = [8, 16], strides = [1, 1]} : vector<32x16xf32> to vector<8x16xf32>
    %75 = arith.truncf %74 : vector<8x16xf32> to vector<8x16xbf16>
    %cst_33 = arith.constant dense<0.000000e+00> : vector<8x16xf32>
    %76 = tpu.matmul %71, %73, %cst_33 {dimension_numbers = #tpu.dot_dimension_numbers<[0], [0], [1], [1], [0, 1, 1, 1], [], []>} : vector<8x8xbf16>, vector<8x16xbf16>, vector<8x16xf32> -> vector<8x16xf32>
    %77 = arith.addf %76, %42 : vector<8x16xf32>
    %cst_34 = arith.constant dense<0xFF800000> : vector<8xf32>
    %78 = vector.multi_reduction <maximumf>, %77, %cst_34 [1] : vector<8x16xf32> to vector<8xf32>
    %79 = vector.shape_cast %78 : vector<8xf32> to vector<8x1xf32>
    %80 = vector.broadcast %79 : vector<8x1xf32> to vector<8x16xf32>
    %81 = arith.subf %77, %80 : vector<8x16xf32>
    %82 = math.exp %81 : vector<8x16xf32>
    %cst_35 = arith.constant dense<0.000000e+00> : vector<8xf32>
    %83 = vector.multi_reduction <add>, %82, %cst_35 [1] : vector<8x16xf32> to vector<8xf32>
    %84 = vector.shape_cast %83 : vector<8xf32> to vector<8x1xf32>
    %85 = tpu.reciprocal %84 {approx = true} : vector<8x1xf32> -> vector<8x1xf32>
    %86 = vector.broadcast %85 : vector<8x1xf32> to vector<8x16xf32>
    %87 = arith.mulf %82, %86 : vector<8x16xf32>
    %88 = arith.truncf %87 : vector<8x16xf32> to vector<8x16xbf16>
    %cst_36 = arith.constant dense<0.000000e+00> : vector<8x8xf32>
    %89 = tpu.matmul %88, %75, %cst_36 {dimension_numbers = #tpu.dot_dimension_numbers<[1], [1], [0], [0], [0, 0, 1, 0], [], []>} : vector<8x16xbf16>, vector<8x16xbf16>, vector<8x8xf32> -> vector<8x8xf32>
    %90 = arith.truncf %89 : vector<8x8xf32> to vector<8x8xbf16>
    %c8 = arith.constant 8 : index
    %c0_37 = arith.constant 0 : index
    %91 = vector.load %arg9[%c8, %c0_37] : memref<32x32xbf16, #tpu.memory_space<vmem>>, vector<8x32xbf16>
    %cst_38 = arith.constant dense<0.000000e+00> : vector<8x32xf32>
    %92 = tpu.matmul %90, %91, %cst_38 {dimension_numbers = #tpu.dot_dimension_numbers<[1], [0], [0], [1], [0, 0, 1, 1], [], []>} : vector<8x8xbf16>, vector<8x32xbf16>, vector<8x32xf32> -> vector<8x32xf32>
    %93 = arith.addf %69, %92 : vector<8x32xf32>
    %94 = vector.extract_strided_slice %31 {offsets = [16, 0], sizes = [8, 8], strides = [1, 1]} : vector<32x8xf32> to vector<8x8xf32>
    %95 = arith.truncf %94 : vector<8x8xf32> to vector<8x8xbf16>
    %96 = vector.extract_strided_slice %43 {offsets = [16, 0], sizes = [8, 16], strides = [1, 1]} : vector<32x16xf32> to vector<8x16xf32>
    %97 = arith.truncf %96 : vector<8x16xf32> to vector<8x16xbf16>
    %98 = vector.extract_strided_slice %44 {offsets = [16, 0], sizes = [8, 16], strides = [1, 1]} : vector<32x16xf32> to vector<8x16xf32>
    %99 = arith.truncf %98 : vector<8x16xf32> to vector<8x16xbf16>
    %cst_39 = arith.constant dense<0.000000e+00> : vector<8x16xf32>
    %100 = tpu.matmul %95, %97, %cst_39 {dimension_numbers = #tpu.dot_dimension_numbers<[0], [0], [1], [1], [0, 1, 1, 1], [], []>} : vector<8x8xbf16>, vector<8x16xbf16>, vector<8x16xf32> -> vector<8x16xf32>
    %101 = arith.addf %100, %42 : vector<8x16xf32>
    %cst_40 = arith.constant dense<0xFF800000> : vector<8xf32>
    %102 = vector.multi_reduction <maximumf>, %101, %cst_40 [1] : vector<8x16xf32> to vector<8xf32>
    %103 = vector.shape_cast %102 : vector<8xf32> to vector<8x1xf32>
    %104 = vector.broadcast %103 : vector<8x1xf32> to vector<8x16xf32>
    %105 = arith.subf %101, %104 : vector<8x16xf32>
    %106 = math.exp %105 : vector<8x16xf32>
    %cst_41 = arith.constant dense<0.000000e+00> : vector<8xf32>
    %107 = vector.multi_reduction <add>, %106, %cst_41 [1] : vector<8x16xf32> to vector<8xf32>
    %108 = vector.shape_cast %107 : vector<8xf32> to vector<8x1xf32>
    %109 = tpu.reciprocal %108 {approx = true} : vector<8x1xf32> -> vector<8x1xf32>
    %110 = vector.broadcast %109 : vector<8x1xf32> to vector<8x16xf32>
    %111 = arith.mulf %106, %110 : vector<8x16xf32>
    %112 = arith.truncf %111 : vector<8x16xf32> to vector<8x16xbf16>
    %cst_42 = arith.constant dense<0.000000e+00> : vector<8x8xf32>
    %113 = tpu.matmul %112, %99, %cst_42 {dimension_numbers = #tpu.dot_dimension_numbers<[1], [1], [0], [0], [0, 0, 1, 0], [], []>} : vector<8x16xbf16>, vector<8x16xbf16>, vector<8x8xf32> -> vector<8x8xf32>
    %114 = arith.truncf %113 : vector<8x8xf32> to vector<8x8xbf16>
    %c16 = arith.constant 16 : index
    %c0_43 = arith.constant 0 : index
    %115 = vector.load %arg9[%c16, %c0_43] : memref<32x32xbf16, #tpu.memory_space<vmem>>, vector<8x32xbf16>
    %cst_44 = arith.constant dense<0.000000e+00> : vector<8x32xf32>
    %116 = tpu.matmul %114, %115, %cst_44 {dimension_numbers = #tpu.dot_dimension_numbers<[1], [0], [0], [1], [0, 0, 1, 1], [], []>} : vector<8x8xbf16>, vector<8x32xbf16>, vector<8x32xf32> -> vector<8x32xf32>
    %117 = arith.addf %93, %116 : vector<8x32xf32>
    %118 = vector.extract_strided_slice %31 {offsets = [24, 0], sizes = [8, 8], strides = [1, 1]} : vector<32x8xf32> to vector<8x8xf32>
    %119 = arith.truncf %118 : vector<8x8xf32> to vector<8x8xbf16>
    %120 = vector.extract_strided_slice %43 {offsets = [24, 0], sizes = [8, 16], strides = [1, 1]} : vector<32x16xf32> to vector<8x16xf32>
    %121 = arith.truncf %120 : vector<8x16xf32> to vector<8x16xbf16>
    %122 = vector.extract_strided_slice %44 {offsets = [24, 0], sizes = [8, 16], strides = [1, 1]} : vector<32x16xf32> to vector<8x16xf32>
    %123 = arith.truncf %122 : vector<8x16xf32> to vector<8x16xbf16>
    %cst_45 = arith.constant dense<0.000000e+00> : vector<8x16xf32>
    %124 = tpu.matmul %119, %121, %cst_45 {dimension_numbers = #tpu.dot_dimension_numbers<[0], [0], [1], [1], [0, 1, 1, 1], [], []>} : vector<8x8xbf16>, vector<8x16xbf16>, vector<8x16xf32> -> vector<8x16xf32>
    %125 = arith.addf %124, %42 : vector<8x16xf32>
    %cst_46 = arith.constant dense<0xFF800000> : vector<8xf32>
    %126 = vector.multi_reduction <maximumf>, %125, %cst_46 [1] : vector<8x16xf32> to vector<8xf32>
    %127 = vector.shape_cast %126 : vector<8xf32> to vector<8x1xf32>
    %128 = vector.broadcast %127 : vector<8x1xf32> to vector<8x16xf32>
    %129 = arith.subf %125, %128 : vector<8x16xf32>
    %130 = math.exp %129 : vector<8x16xf32>
    %cst_47 = arith.constant dense<0.000000e+00> : vector<8xf32>
    %131 = vector.multi_reduction <add>, %130, %cst_47 [1] : vector<8x16xf32> to vector<8xf32>
    %132 = vector.shape_cast %131 : vector<8xf32> to vector<8x1xf32>
    %133 = tpu.reciprocal %132 {approx = true} : vector<8x1xf32> -> vector<8x1xf32>
    %134 = vector.broadcast %133 : vector<8x1xf32> to vector<8x16xf32>
    %135 = arith.mulf %130, %134 : vector<8x16xf32>
    %136 = arith.truncf %135 : vector<8x16xf32> to vector<8x16xbf16>
    %cst_48 = arith.constant dense<0.000000e+00> : vector<8x8xf32>
    %137 = tpu.matmul %136, %123, %cst_48 {dimension_numbers = #tpu.dot_dimension_numbers<[1], [1], [0], [0], [0, 0, 1, 0], [], []>} : vector<8x16xbf16>, vector<8x16xbf16>, vector<8x8xf32> -> vector<8x8xf32>
    %138 = arith.truncf %137 : vector<8x8xf32> to vector<8x8xbf16>
    %c24 = arith.constant 24 : index
    %c0_49 = arith.constant 0 : index
    %139 = vector.load %arg9[%c24, %c0_49] : memref<32x32xbf16, #tpu.memory_space<vmem>>, vector<8x32xbf16>
    %cst_50 = arith.constant dense<0.000000e+00> : vector<8x32xf32>
    %140 = tpu.matmul %138, %139, %cst_50 {dimension_numbers = #tpu.dot_dimension_numbers<[1], [0], [0], [1], [0, 0, 1, 1], [], []>} : vector<8x8xbf16>, vector<8x32xbf16>, vector<8x32xf32> -> vector<8x32xf32>
    %141 = arith.addf %117, %140 : vector<8x32xf32>
    %142 = arith.addf %1, %141 : vector<8x32xf32>
    %c0_51 = arith.constant 0 : index
    %c0_52 = arith.constant 0 : index
    %143 = vector.load %arg10[%c0_51, %c0_52] : memref<1x32xf32, #tpu.memory_space<vmem>>, vector<1x32xf32>
    %144 = vector.broadcast %143 : vector<1x32xf32> to vector<8x32xf32>
    %145 = arith.addf %142, %144 : vector<8x32xf32>
    %c0_53 = arith.constant 0 : index
    %c0_54 = arith.constant 0 : index
    %c0_55 = arith.constant 0 : index
    %146 = vector.load %arg11[%c0_53, %c0_54, %c0_55] : memref<1x8x32xf32, #tpu.memory_space<vmem>>, vector<1x8x32xf32>
    %147 = vector.shape_cast %146 : vector<1x8x32xf32> to vector<8x32xf32>
    %148 = vector.shape_cast %145 : vector<8x32xf32> to vector<1x8x32xf32>
    tpu.vector_store %arg11[%c0_53, %c0_54, %c0_55], %148 {strides = array<i32>} : memref<1x8x32xf32, #tpu.memory_space<vmem>>, vector<1x8x32xf32>,
    return
  }
  func.func @transform_0(%arg0: i32) -> (i32, i32, i32) {
    %c0_i32 = arith.constant 0 : i32
    %c0_i32_0 = arith.constant 0 : i32
    %c0_i32_1 = arith.constant 0 : i32
    return %arg0, %c0_i32, %c0_i32_0 : i32, i32, i32
  }
  func.func @transform_1(%arg0: i32) -> (i32, i32, i32) {
    %c0_i32 = arith.constant 0 : i32
    %c0_i32_0 = arith.constant 0 : i32
    %c0_i32_1 = arith.constant 0 : i32
    return %arg0, %c0_i32, %c0_i32_0 : i32, i32, i32
  }
  func.func @transform_2(%arg0: i32) -> (i32, i32) {
    %c0_i32 = arith.constant 0 : i32
    %c0_i32_0 = arith.constant 0 : i32
    %c0_i32_1 = arith.constant 0 : i32
    return %c0_i32, %c0_i32_0 : i32, i32
  }
  func.func @transform_3(%arg0: i32) -> (i32, i32) {
    %c0_i32 = arith.constant 0 : i32
    %c0_i32_0 = arith.constant 0 : i32
    %c0_i32_1 = arith.constant 0 : i32
    return %c0_i32, %c0_i32_0 : i32, i32
  }
  func.func @transform_4(%arg0: i32) -> (i32, i32) {
    %c0_i32 = arith.constant 0 : i32
    %c0_i32_0 = arith.constant 0 : i32
    %c0_i32_1 = arith.constant 0 : i32
    return %c0_i32, %c0_i32_0 : i32, i32
  }
  func.func @transform_5(%arg0: i32) -> (i32, i32) {
    %c0_i32 = arith.constant 0 : i32
    %c0_i32_0 = arith.constant 0 : i32
    %c0_i32_1 = arith.constant 0 : i32
    return %c0_i32, %c0_i32_0 : i32, i32
  }
  func.func @transform_6(%arg0: i32) -> (i32, i32) {
    %c0_i32 = arith.constant 0 : i32
    %c0_i32_0 = arith.constant 0 : i32
    %c0_i32_1 = arith.constant 0 : i32
    return %c0_i32, %c0_i32_0 : i32, i32
  }
  func.func @transform_7(%arg0: i32) -> (i32, i32) {
    %c0_i32 = arith.constant 0 : i32
    %c0_i32_0 = arith.constant 0 : i32
    %c0_i32_1 = arith.constant 0 : i32
    return %c0_i32, %c0_i32_0 : i32, i32
  }
  func.func @transform_8(%arg0: i32) -> (i32, i32) {
    %c0_i32 = arith.constant 0 : i32
    %c0_i32_0 = arith.constant 0 : i32
    %c0_i32_1 = arith.constant 0 : i32
    return %c0_i32, %c0_i32_0 : i32, i32
  }
  func.func @transform_9(%arg0: i32) -> (i32, i32) {
    %c0_i32 = arith.constant 0 : i32
    %c0_i32_0 = arith.constant 0 : i32
    %c0_i32_1 = arith.constant 0 : i32
    return %c0_i32, %c0_i32_0 : i32, i32
  }
  func.func @transform_10(%arg0: i32) -> (i32, i32, i32) {
    %c0_i32 = arith.constant 0 : i32
    %c0_i32_0 = arith.constant 0 : i32
    %c0_i32_1 = arith.constant 0 : i32
    return %arg0, %c0_i32, %c0_i32_0 : i32, i32, i32
  }
}

</mosaic_0001>

<bundles_post_ra>
// kernel: transformer_decoder.8
= control target key start
LH: loop header
LB: loop body
LE: loop exit
PB: predicated region body
PF: predicated region fallthrough
CT: control target
= control target key end

     0   :  { %vm31_vm0 = vcmask 261120   ;;  %v290_v15 = vmov 0.0   ;;  %vm291_vm1 = vmmov 0   ;;  %vm185_vm2 = vcmask 523264   ;;  %s391_s0 = inlined_call_operand.vmem [shape: f32[16,32], index: 0, kind: input, shape index: {}]   ;;  %s392_s3 = inlined_call_operand.vmem [shape: bf16[32,64], index: 3, kind: input, shape index: {}]   ;;  %s393_s5 = inlined_call_operand.vmem [shape: bf16[64,32], index: 5, kind: input, shape index: {}]   ;;  %s394_s1 = inlined_call_operand.vmem [shape: f32[1,32], index: 1, kind: input, shape index: {}]   ;;  %s395_s2 = inlined_call_operand.vmem [shape: f32[1,32], index: 2, kind: input, shape index: {}]   ;;  %s396_s4 = inlined_call_operand.vmem [shape: f32[1,64], index: 4, kind: input, shape index: {}]   ;;  %s397_s6 = inlined_call_operand.vmem [shape: f32[1,32], index: 6, kind: input, shape index: {}]   ;;  %s398_s7 = inlined_call_operand.vmem [shape: f32[16,32], index: 7, kind: output, shape index: {}]  }
   0x1   :  { %v335_v0 = vld [vmem:[%s391_s0] sm:$0xff]  ;;  %v340_v1 = vld [vmem:[%s391_s0 + $0x8] sm:$0xff]  ;;  %258 = vmatprep.subr.bf16.mxu0 %v290_v15  ;;  %266 = vmatprep.subr.bf16.mxu1 %v290_v15  ;;  %v284_v36 = vld [vmem:[%s393_s5 + $0x10] sm:$0xff]  }
   0x2   :  { %v32_v2 = vsel %vm31_vm0, %v335_v0, 0.0  ;;  %v35_v3 = vsel %vm31_vm0, %v340_v1, 0.0  ;;  %v280_v14 = vld [vmem:[%s392_s3] sm:$0xff]   ;;  %v281_v16 = vld [vmem:[%s392_s3 + $0x8] sm:$0xff]   ;;  %262 = vmatprep.mubr.msk.bf16.mxu0 %vm291_vm1, %v290_v15  ;;  %274 = vmatprep.mubr.msk.bf16.mxu1 %vm291_vm1, %v290_v15  ;;  %v285_v37 = vld [vmem:[%s393_s5 + $0x18] sm:$0xff]  }
   0x3   :  { %33 = vadd.xlane.f32.xlu0 %v32_v2  ;;  %259 = vmatpush3.bf16.msra.mxu0 %v280_v14  ;;  %v282_v17 = vld [vmem:[%s393_s5] sm:$0xff]   ;;  %v283_v18 = vld [vmem:[%s393_s5 + $0x8] sm:$0xff]  }
   0x4   :  { %260 = vmatprep.subr.bf16.mxu0 %v290_v15  ;;  %267 = vmatpush3.bf16.msra.mxu1 %v282_v17  ;;  %v238_v27 = vld [vmem:[%s394_s1] ss:$0 sm:$0xff] }
   0x5   :  { %268 = vmatprep.subr.bf16.mxu1 %v290_v15  ;;  %v239_v31 = vld [vmem:[%s395_s2] ss:$0 sm:$0xff] }
   0x6   :  { %v240_v38 = vld [vmem:[%s396_s4] ss:$0 sm:$0xff] }
   0x7   :  { %36 = vadd.xlane.f32.xlu0 %v35_v3  ;;  %261 = vmatpush3.bf16.msra.mxu0 %v281_v16  ;;  %v244_v48 = vld [vmem:[%s397_s6] ss:$0 sm:$0xff] }
   0x8   :  { %269 = vmatpush3.bf16.msra.mxu1 %v283_v18 }
   0x9   :  { %270 = vmatprep.subr.bf16.mxu1 %v290_v15 }
   0xc   :  { %271 = vmatpush3.bf16.msra.mxu1 %v284_v36 }
   0xd   :  { %272 = vmatprep.subr.bf16.mxu1 %v290_v15 }
  0x10   :  { %273 = vmatpush3.bf16.msra.mxu1 %v285_v37 }
  0x90   :  { %v34_v4 = vpop.xlane.xlu0 %33 }
  0x91   :  { %v39_v5 = vmul.f32 0.03125, %v34_v4 }
  0x93   :  { %v41_v6 = vsub.f32 %v335_v0, %v39_v5 }
  0x94   :  { %v37_v7 = vpop.xlane.xlu0 %36 }
  0x95   :  { %v40_v8 = vmul.f32 0.03125, %v37_v7  ;;  %v43_v9 = vmul.f32 %v41_v6, %v41_v6 }
  0x97   :  { %v42_v10 = vsub.f32 %v340_v1, %v40_v8  ;;  %v45_v11 = vsel %vm31_vm0, %v43_v9, 0.0 }
  0x98   :  { %46 = vadd.xlane.f32.xlu1 %v45_v11 }
  0x99   :  { %v44_v12 = vmul.f32 %v42_v10, %v42_v10 }
  0x9b   :  { %v48_v13 = vsel %vm31_vm0, %v44_v12, 0.0 }
  0x9c   :  { %49 = vadd.xlane.f32.xlu1 %v48_v13 }
 0x125   :  { %v47_v19 = vpop.xlane.xlu1 %46 }
 0x126   :  { %v51_v20 = vmul.f32 0.03125, %v47_v19 }
 0x128   :  { %v53_v21 = vadd.f32 1e-05, %v51_v20 }
 0x129   :  { %v50_v22 = vpop.xlane.xlu1 %49 }
 0x12a   :  { %286 = vrsqrt.f32 %v53_v21  ;;  %v52_v23 = vmul.f32 0.03125, %v50_v22 }
 0x12c   :  { %v54_v24 = vadd.f32 1e-05, %v52_v23 }
 0x12e   :  { %288 = vrsqrt.f32 %v54_v24 }
 0x134   :  { %v287_v25 = vpop.eup %286 }
 0x135   :  { %v57_v26 = vmul.f32 %v287_v25, %v41_v6 }
 0x137   :  { %v65_v30 = vmul.f32 %v238_v27, %v57_v26 }
 0x138   :  { %v289_v28 = vpop.eup %288 }
 0x139   :  { %v58_v29 = vmul.f32 %v289_v28, %v42_v10  ;;  %v73_v33 = vadd.f32 %v239_v31, %v65_v30 }
 0x13b   :  { %v66_v32 = vmul.f32 %v238_v27, %v58_v29 }
 0x13d   :  { %v74_v34 = vadd.f32 %v239_v31, %v66_v32 }
 0x13f   :  { %v75_v35 = vpack.c.bf16 %v74_v34, %v73_v33 }
 0x141   :  { %263 = vmatmul.mubr.msk.bf16.vlgmr.msra.gmra.mrb[0].mxu0 %vm31_vm0, %v75_v35 }
 0x214   :  { %v136_v39 = vpop.f32.mrb[0].mxu0 }
 0x215   :  { %v137_v40 = vadd.f32 %v240_v38, %v136_v39  ;;  %v264_v41 = vpop.f32.mrb[1].mxu0 }
 0x216   :  { %v139_v42 = vpop.f32.mrb[2].mxu0 }
 0x217   :  { %v140_v43 = vadd.f32 %v240_v38, %v139_v42  ;;  %v265_v44 = vpop.f32.mrb[3].mxu0  ;;  %v143_v45 = vmax.f32 %v137_v40, 0.0 }
 0x219   :  { %v144_v46 = vmax.f32 %v140_v43, 0.0 }
 0x21b   :  { %v145_v47 = vpack.c.bf16 %v144_v46, %v143_v45 }
 0x21d   :  { %275 = vmatmul.mubr.msk.bf16.vlgmr.msra.gmra.mrb[0].mxu1 %vm185_vm2, %v145_v47 }
 0x2f0   :  { %v223_v49 = vpop.f32.mrb[0].mxu1 }
 0x2f1   :  { %v224_v50 = vadd.f32 %v244_v48, %v223_v49  ;;  %v276_v51 = vpop.f32.mrb[1].mxu1 }
 0x2f2   :  { %v226_v52 = vpop.f32.mrb[2].mxu1 }
 0x2f3   :  { %v230_v53 = vadd.f32 %v224_v50, %v335_v0  ;;  %v227_v54 = vadd.f32 %v244_v48, %v226_v52  ;;  %v277_v55 = vpop.f32.mrb[3].mxu1 }
 0x2f5   :  { %232 = vst.msk [vmem:[%s398_s7] sm:$0xff] %vm31_vm0, %v230_v53  ;;  %v231_v56 = vadd.f32 %v227_v54, %v340_v1 }
 0x2f7   :  { %233 = vst.msk [vmem:[%s398_s7 + $0x8] sm:$0xff] %vm31_vm0, %v231_v56 }

// kernel: transformer_decoder.11
= control target key start
LH: loop header
LB: loop body
LE: loop exit
PB: predicated region body
PF: predicated region fallthrough
CT: control target
= control target key end

     0   :  { %vm37_vm0 = vcmask 261120   ;;  %v346_v15 = vmov 0.0   ;;  %vm347_vm1 = vmmov 0   ;;  %vm191_vm2 = vcmask 523264   ;;  %s467_s0 = inlined_call_operand.vmem [shape: f32[16,32], index: 0, kind: input, shape index: {}]   ;;  %s468_s3 = inlined_call_operand.vmem [shape: bf16[32,64], index: 3, kind: input, shape index: {}]   ;;  %s469_s5 = inlined_call_operand.vmem [shape: bf16[64,32], index: 5, kind: input, shape index: {}]   ;;  %s470_s1 = inlined_call_operand.vmem [shape: f32[1,32], index: 1, kind: input, shape index: {}]   ;;  %s471_s2 = inlined_call_operand.vmem [shape: f32[1,32], index: 2, kind: input, shape index: {}]   ;;  %s472_s4 = inlined_call_operand.vmem [shape: f32[1,64], index: 4, kind: input, shape index: {}]   ;;  %s473_s6 = inlined_call_operand.vmem [shape: f32[1,32], index: 6, kind: input, shape index: {}]   ;;  %s474_s7 = inlined_call_operand.vmem [shape: f32[1,32], index: 7, kind: input, shape index: {}]   ;;  %s475_s8 = inlined_call_operand.vmem [shape: f32[1,32], index: 8, kind: input, shape index: {}]   ;;  %s476_s9 = inlined_call_operand.vmem [shape: f32[16,32], index: 9, kind: output, shape index: {}]  }
   0x1   :  { %v401_v0 = vld [vmem:[%s467_s0] sm:$0xff]  ;;  %v406_v1 = vld [vmem:[%s467_s0 + $0x8] sm:$0xff]  ;;  %310 = vmatprep.subr.bf16.mxu0 %v346_v15  ;;  %318 = vmatprep.subr.bf16.mxu1 %v346_v15  ;;  %v336_v36 = vld [vmem:[%s469_s5 + $0x10] sm:$0xff]  }
   0x2   :  { %v38_v2 = vsel %vm37_vm0, %v401_v0, 0.0  ;;  %v41_v3 = vsel %vm37_vm0, %v406_v1, 0.0  ;;  %v332_v14 = vld [vmem:[%s468_s3] sm:$0xff]   ;;  %v333_v16 = vld [vmem:[%s468_s3 + $0x8] sm:$0xff]   ;;  %314 = vmatprep.mubr.msk.bf16.mxu0 %vm347_vm1, %v346_v15  ;;  %326 = vmatprep.mubr.msk.bf16.mxu1 %vm347_vm1, %v346_v15  ;;  %v337_v37 = vld [vmem:[%s469_s5 + $0x18] sm:$0xff]  }
   0x3   :  { %39 = vadd.xlane.f32.xlu0 %v38_v2  ;;  %311 = vmatpush3.bf16.msra.mxu0 %v332_v14  ;;  %v334_v17 = vld [vmem:[%s469_s5] sm:$0xff]   ;;  %v335_v18 = vld [vmem:[%s469_s5 + $0x8] sm:$0xff]  }
   0x4   :  { %312 = vmatprep.subr.bf16.mxu0 %v346_v15  ;;  %319 = vmatpush3.bf16.msra.mxu1 %v334_v17  ;;  %v288_v27 = vld [vmem:[%s470_s1] ss:$0 sm:$0xff] }
   0x5   :  { %320 = vmatprep.subr.bf16.mxu1 %v346_v15  ;;  %v289_v31 = vld [vmem:[%s471_s2] ss:$0 sm:$0xff] }
   0x6   :  { %v290_v38 = vld [vmem:[%s472_s4] ss:$0 sm:$0xff] }
   0x7   :  { %42 = vadd.xlane.f32.xlu0 %v41_v3  ;;  %313 = vmatpush3.bf16.msra.mxu0 %v333_v16  ;;  %v294_v48 = vld [vmem:[%s473_s6] ss:$0 sm:$0xff] }
   0x8   :  { %321 = vmatpush3.bf16.msra.mxu1 %v335_v18 }
   0x9   :  { %322 = vmatprep.subr.bf16.mxu1 %v346_v15 }
   0xc   :  { %323 = vmatpush3.bf16.msra.mxu1 %v336_v36 }
   0xd   :  { %324 = vmatprep.subr.bf16.mxu1 %v346_v15  ;;  %v301_v15 = vld [vmem:[%s475_s8] ss:$0 sm:$0xff] }
  0x10   :  { %325 = vmatpush3.bf16.msra.mxu1 %v337_v37 }
  0x90   :  { %v40_v4 = vpop.xlane.xlu0 %39 }
  0x91   :  { %v45_v5 = vmul.f32 0.03125, %v40_v4 }
  0x93   :  { %v47_v6 = vsub.f32 %v401_v0, %v45_v5 }
  0x94   :  { %v43_v7 = vpop.xlane.xlu0 %42 }
  0x95   :  { %v46_v8 = vmul.f32 0.03125, %v43_v7  ;;  %v49_v9 = vmul.f32 %v47_v6, %v47_v6 }
  0x97   :  { %v48_v10 = vsub.f32 %v406_v1, %v46_v8  ;;  %v51_v11 = vsel %vm37_vm0, %v49_v9, 0.0 }
  0x98   :  { %52 = vadd.xlane.f32.xlu1 %v51_v11 }
  0x99   :  { %v50_v12 = vmul.f32 %v48_v10, %v48_v10 }
  0x9b   :  { %v54_v13 = vsel %vm37_vm0, %v50_v12, 0.0  ;;  %v300_v12 = vld [vmem:[%s474_s7] ss:$0 sm:$0xff] }
  0x9c   :  { %55 = vadd.xlane.f32.xlu1 %v54_v13 }
 0x125   :  { %v53_v19 = vpop.xlane.xlu1 %52 }
 0x126   :  { %v57_v20 = vmul.f32 0.03125, %v53_v19 }
 0x128   :  { %v59_v21 = vadd.f32 1e-05, %v57_v20 }
 0x129   :  { %v56_v22 = vpop.xlane.xlu1 %55 }
 0x12a   :  { %338 = vrsqrt.f32 %v59_v21  ;;  %v58_v23 = vmul.f32 0.03125, %v56_v22 }
 0x12c   :  { %v60_v24 = vadd.f32 1e-05, %v58_v23 }
 0x12e   :  { %340 = vrsqrt.f32 %v60_v24 }
 0x134   :  { %v339_v25 = vpop.eup %338 }
 0x135   :  { %v63_v26 = vmul.f32 %v339_v25, %v47_v6 }
 0x137   :  { %v71_v30 = vmul.f32 %v288_v27, %v63_v26 }
 0x138   :  { %v341_v28 = vpop.eup %340 }
 0x139   :  { %v64_v29 = vmul.f32 %v341_v28, %v48_v10  ;;  %v79_v33 = vadd.f32 %v289_v31, %v71_v30 }
 0x13b   :  { %v72_v32 = vmul.f32 %v288_v27, %v64_v29 }
 0x13d   :  { %v80_v34 = vadd.f32 %v289_v31, %v72_v32 }
 0x13f   :  { %v81_v35 = vpack.c.bf16 %v80_v34, %v79_v33 }
 0x141   :  { %315 = vmatmul.mubr.msk.bf16.vlgmr.msra.gmra.mrb[0].mxu0 %vm37_vm0, %v81_v35 }
 0x214   :  { %v142_v39 = vpop.f32.mrb[0].mxu0 }
 0x215   :  { %v143_v40 = vadd.f32 %v290_v38, %v142_v39  ;;  %v316_v41 = vpop.f32.mrb[1].mxu0 }
 0x216   :  { %v145_v42 = vpop.f32.mrb[2].mxu0 }
 0x217   :  { %v146_v43 = vadd.f32 %v290_v38, %v145_v42  ;;  %v317_v44 = vpop.f32.mrb[3].mxu0  ;;  %v149_v45 = vmax.f32 %v143_v40, 0.0 }
 0x219   :  { %v150_v46 = vmax.f32 %v146_v43, 0.0 }
 0x21b   :  { %v151_v47 = vpack.c.bf16 %v150_v46, %v149_v45 }
 0x21d   :  { %327 = vmatmul.mubr.msk.bf16.vlgmr.msra.gmra.mrb[0].mxu1 %vm191_vm2, %v151_v47 }
 0x2f0   :  { %v229_v49 = vpop.f32.mrb[0].mxu1 }
 0x2f1   :  { %v230_v50 = vadd.f32 %v294_v48, %v229_v49  ;;  %v328_v51 = vpop.f32.mrb[1].mxu1 }
 0x2f2   :  { %v232_v52 = vpop.f32.mrb[2].mxu1 }
 0x2f3   :  { %v233_v53 = vadd.f32 %v294_v48, %v232_v52  ;;  %v329_v54 = vpop.f32.mrb[3].mxu1  ;;  %v236_v55 = vadd.f32 %v230_v50, %v401_v0 }
 0x2f5   :  { %v240_v56 = vsel %vm37_vm0, %v236_v55, 0.0  ;;  %v237_v57 = vadd.f32 %v233_v53, %v406_v1 }
 0x2f6   :  { %241 = vadd.xlane.f32.xlu0 %v240_v56 }
 0x2f7   :  { %v243_v58 = vsel %vm37_vm0, %v237_v57, 0.0 }
 0x2f8   :  { %244 = vadd.xlane.f32.xlu1 %v243_v58 }
 0x383   :  { %v242_v59 = vpop.xlane.xlu0 %241 }
 0x384   :  { %v246_v60 = vmul.f32 0.03125, %v242_v59 }
 0x385   :  { %v245_v61 = vpop.xlane.xlu1 %244 }
 0x386   :  { %v248_v62 = vsub.f32 %v236_v55, %v246_v60  ;;  %v247_v63 = vmul.f32 0.03125, %v245_v61 }
 0x388   :  { %v249_v2 = vsub.f32 %v237_v57, %v247_v63  ;;  %v250_v3 = vmul.f32 %v248_v62, %v248_v62 }
 0x38a   :  { %v252_v4 = vsel %vm37_vm0, %v250_v3, 0.0  ;;  %v251_v5 = vmul.f32 %v249_v2, %v249_v2 }
 0x38b   :  { %253 = vadd.xlane.f32.xlu0 %v252_v4 }
 0x38c   :  { %v255_v0 = vsel %vm37_vm0, %v251_v5, 0.0 }
 0x38d   :  { %256 = vadd.xlane.f32.xlu1 %v255_v0 }
 0x418   :  { %v254_v6 = vpop.xlane.xlu0 %253 }
 0x419   :  { %v258_v1 = vmul.f32 0.03125, %v254_v6 }
 0x41a   :  { %v257_v7 = vpop.xlane.xlu1 %256 }
 0x41b   :  { %v260_v8 = vadd.f32 1e-05, %v258_v1  ;;  %v259_v9 = vmul.f32 0.03125, %v257_v7 }
 0x41d   :  { %342 = vrsqrt.f32 %v260_v8  ;;  %v261_v10 = vadd.f32 1e-05, %v259_v9 }
 0x41f   :  { %344 = vrsqrt.f32 %v261_v10 }
 0x427   :  { %v343_v11 = vpop.eup %342 }
 0x428   :  { %v264_v13 = vmul.f32 %v343_v11, %v248_v62 }
 0x429   :  { %v345_v14 = vpop.eup %344 }
 0x42a   :  { %v272_v16 = vmul.f32 %v300_v12, %v264_v13  ;;  %v265_v17 = vmul.f32 %v345_v14, %v249_v2 }
 0x42c   :  { %v280_v18 = vadd.f32 %v301_v15, %v272_v16  ;;  %v273_v19 = vmul.f32 %v300_v12, %v265_v17 }
 0x42e   :  { %282 = vst.msk [vmem:[%s476_s9] sm:$0xff] %vm37_vm0, %v280_v18  ;;  %v281_v20 = vadd.f32 %v301_v15, %v273_v19 }
 0x430   :  { %283 = vst.msk [vmem:[%s476_s9 + $0x8] sm:$0xff] %vm37_vm0, %v281_v20 }

// kernel: transformer_decoder.6
= control target key start
LH: loop header
LB: loop body
LE: loop exit
PB: predicated region body
PF: predicated region fallthrough
CT: control target
= control target key end

     0   :  { %s1517_s24 = smov 0   ;;  %s1729_s0 = inlined_call_operand.vmem [shape: f32[2,8,32], index: 0, kind: input, shape index: {}]   ;;  %s1730_s1 = inlined_call_operand.vmem [shape: f32[1,32], index: 1, kind: input, shape index: {}]   ;;  %s1731_s2 = inlined_call_operand.vmem [shape: f32[1,32], index: 2, kind: input, shape index: {}]   ;;  %s1732_s3 = inlined_call_operand.vmem [shape: bf16[96,32], index: 3, kind: input, shape index: {}]   ;;  %s1733_s4 = inlined_call_operand.vmem [shape: f32[96,1], index: 4, kind: input, shape index: {}]   ;;  %s1734_s5 = inlined_call_operand.vmem [shape: bf16[32,32], index: 5, kind: input, shape index: {}]   ;;  %s1735_s6 = inlined_call_operand.vmem [shape: f32[1,32], index: 6, kind: input, shape index: {}]   ;;  %s1736_s7 = inlined_call_operand.vmem [shape: f32[2,8,32], index: 7, kind: output, shape index: {}]  }
   0x1 LB: > { %s1275_s25 = sadd.s32 4294967295, %s1472_s24   ;;  %p1279_p0 = scmp.ge.s32.totalorder %s1472_s24, 1  ;;  %s1472_s24 = sphi %s1517_s24, %s17_s24  }
   0x2   : > { %p236_p1 = scmp.lt.s32.totalorder %s1472_s24, 3 }
   0x4   : > { %p237_p2 = pnand %p1279_p0, %p236_p1 }
   0x5   : > { %p266_p3 = scmp.lt.s32.totalorder (!%p237_p2), %s1275_s25, 1  ;;  %vm278_vm0 = vcmask (!%p237_p2), 261120   ;;  %v1442_v7 = vld [vmem:[%s1732_s3] sm:$0xff] (!%p237_p2)   ;;  %v1474_v9 = vmov (!%p237_p2), 0   ;;  %v1443_v22 = vld [vmem:[%s1732_s3 + $0x8] sm:$0xff] (!%p237_p2)   ;;  %v1444_v23 = vld [vmem:[%s1732_s3 + $0x10] sm:$0xff] (!%p237_p2)  }
   0x6   : > { %240 = sbr.rel (%p237_p2) target bundleno = 3449 (0xd79), region = 48  ;;  %1344 = vmatprep.mubr.msk.bf16.mxu0 (!%p237_p2), %vm278_vm0, %v1442_v7  ;;  %v320_v8 = vld [vmem:[%s1733_s4] sm:$0xff] (!%p237_p2)  ;;  %1440 = vset.pattern.permute.xlu1 (!%p237_p2), %v1474_v9  ;;  %v1445_v24 = vld [vmem:[%s1732_s3 + $0x18] sm:$0xff] (!%p237_p2)   ;;  %v1475_v25 = vmov (!%p237_p2), 0.0   ;;  %vm1476_vm1 = vmmov (!%p237_p2), 0   ;;  %v1447_v27 = vld [vmem:[%s1732_s3 + $0x28] sm:$0xff] (!%p237_p2)  }
   0x7   : > { %334 = vperm.xlu1 (!%p237_p2), %1440, %v320_v8   ;;  %v324_v10 = vld [vmem:[%s1733_s4 + $0x20] sm:$0xff] (!%p237_p2)  ;;  %1356 = vmatprep.subr.bf16.mxu1 (!%p237_p2), %v1475_v25  ;;  %vm547_vm2 = vcmask (!%p237_p2), 1043456   ;;  %vm543_vm3 = vcmask (!%p237_p2), 64512   ;;  %v321_v49 = vld [vmem:[%s1733_s4 + $0x8] sm:$0xff] (!%p237_p2) }
   0x8   : > { %v1282_v15 = vld [vmem:[%s1730_s1] ss:$0 sm:$0xff] (!%p237_p2)  ;;  %1358 = vmatprep.mubr.msk.bf16.mxu1 (!%p237_p2), %vm1476_vm1, %v1475_v25  ;;  %v325_v53 = vld [vmem:[%s1733_s4 + $0x28] sm:$0xff] (!%p237_p2) }
   0x9   : > { %v1283_v17 = vld [vmem:[%s1731_s2] ss:$0 sm:$0xff] (!%p237_p2) }
   0xa   : > { %v1446_v26 = vld [vmem:[%s1732_s3 + $0x20] sm:$0xff] (!%p237_p2)  }
   0xb   : > { %354 = vperm.xlu1 (!%p237_p2), %1440, %v324_v10   ;;  %v328_v50 = vld [vmem:[%s1733_s4 + $0x40] sm:$0xff] (!%p237_p2) }
   0xd   : > { %s1738_s25 = smov (!%p266_p3, %s1275_s25), 1 }
   0xe   : > { %s1280_s26 = sshll.u32 %s1738_s25, 3 }
   0xf   : > { %s269_s29 = scalar_lea.vmem %s1729_s0, %s1280_s26  ;;  %s273_s19 = scalar_lea.vmem %s1736_s7, %s1280_s26 }
  0x10   : > { %v1533_v0 = vld [vmem:[%s269_s29] sm:$0xff] }
  0x11   : > { %v279_v1 = vsel %vm278_vm0, %v1533_v0, 0.0 }
  0x12   : > { %280 = vadd.xlane.f32.xlu0 %v279_v1 }
  0x86   : > { %v335_v29 = vpop.permute.xlu1 %334 }
  0x8a   : > { %v355_v36 = vpop.permute.xlu1 %354 }
  0x9f   : > { %v281_v2 = vpop.xlane.xlu0 %280 }
  0xa0   : > { %v283_v3 = vmul.f32 0.03125, %v281_v2 }
  0xa2   : > { %v284_v4 = vsub.f32 %v1533_v0, %v283_v3 }
  0xa4   : > { %v285_v5 = vmul.f32 %v284_v4, %v284_v4 }
  0xa6   : > { %v286_v6 = vsel %vm278_vm0, %v285_v5, 0.0  ;;  %v322_v5 = vld [vmem:[%s1733_s4 + $0x10] sm:$0xff] }
  0xa7   : > { %287 = vadd.xlane.f32.xlu0 %v286_v6  ;;  %v326_v6 = vld [vmem:[%s1733_s4 + $0x30] sm:$0xff] }
 0x134   : > { %v288_v11 = vpop.xlane.xlu0 %287 }
 0x135   : > { %v289_v12 = vmul.f32 0.03125, %v288_v11 }
 0x137   : > { %v290_v13 = vadd.f32 1e-05, %v289_v12 }
 0x139   : > { %1448 = vrsqrt.f32 %v290_v13 }
 0x143   : > { %v1449_v14 = vpop.eup %1448 }
 0x144   : > { %v292_v16 = vmul.f32 %v1449_v14, %v284_v4 }
 0x146   : > { %v299_v18 = vmul.f32 %v1282_v15, %v292_v16 }
 0x148   : > { %v306_v19 = vadd.f32 %v1283_v17, %v299_v18 }
 0x14a   : > { %v319_v20 = vpack.c.bf16 %v306_v19, %v306_v19  ;;  %v323_v19 = vld [vmem:[%s1733_s4 + $0x18] sm:$0xff] }
 0x14c   : > { %1428 = vmatprep.subr.msk.bf16.mxu0 %vm278_vm0, %v319_v20  ;;  %v441_v21 = vsel %vm278_vm0, %v319_v20, 0  ;;  %v330_v20 = vld [vmem:[%s1733_s4 + $0x50] sm:$0xff] }
 0x14d   : > { %1343 = vmatpush3.bf16.xpose.msra.mxu0 %v441_v21 }
 0x14e   : > { %1380 = vmatprep.subr.bf16.mxu0 %v1475_v25 }
 0x154   : > { %1345 = vmatmul.mubr.msk.bf16.vlgmr.msra.gmra.mrb[0].mxu0 %vm278_vm0, %v1443_v22 }
 0x155   : > { %1348 = vmatprep.mubr.msk.bf16.mxu0 %vm278_vm0, %v1444_v23 }
 0x15c   : > { %1349 = vmatmul.mubr.msk.bf16.gmra.mrb[4].mxu0 %vm278_vm0, %v1445_v24 }
 0x15d   : > { %1352 = vmatprep.mubr.msk.bf16.mxu0 %vm278_vm0, %v1446_v26 }
 0x164   : > { %1353 = vmatmul.mubr.msk.bf16.gmra.mrb[8].mxu0 %vm278_vm0, %v1447_v27 }
 0x165   : > { %1382 = vmatprep.mubr.msk.bf16.mxu0 %vm1476_vm1, %v1475_v25 }
 0x227   : > { %v1584_v28 = vpop.f32.mrb[0].mxu0 }
 0x228   : > { %v477_v30 = vpop.f32.mrb[1].mxu0 }
 0x229   : > { %v478_v31 = vadd.f32 %v477_v30, %v335_v29  ;;  %v1586_v32 = vpop.f32.mrb[2].mxu0 }
 0x22a   : > { %v480_v33 = vpop.f32.mrb[3].mxu0 }
 0x22b   : > { %v524_v34 = vpack.c.bf16 %v478_v31, %v478_v31 }
 0x22d   : > { %527 = vxpose.xlu0.c.b16.start.end [1/1] (short) (narrow) %v524_v34, 16 }
 0x22f   : > { %v1588_v35 = vpop.f32.mrb[4].mxu0 }
 0x230   : > { %v493_v37 = vpop.f32.mrb[5].mxu0 }
 0x231   : > { %v494_v38 = vadd.f32 %v493_v37, %v355_v36  ;;  %v1590_v39 = vpop.f32.mrb[6].mxu0 }
 0x232   : > { %v496_v40 = vpop.f32.mrb[7].mxu0 }
 0x233   : > { %v525_v41 = vpack.c.bf16 %v494_v38, %v494_v38 }
 0x235   : > { %v549_v42 = vsel %vm547_vm2, %v525_v41, 0 }
 0x236   : > { %1357 = vmatpush3.bf16.msra.mxu1 %v549_v42 }
 0x237   : > { %1362 = vmatprep.subr.bf16.mxu1 %v1475_v25  ;;  %v1604_v51 = vpop.f32.mrb[8].mxu0 }
 0x238   : > { %v509_v52 = vpop.f32.mrb[9].mxu0 }
 0x239   : > { %v1612_v1 = vpop.f32.mrb[10].mxu0 }
 0x23a   : > { %v1614_v2 = vpop.f32.mrb[11].mxu0 }
 0x293   : > { %v535_v43 = vpop.trf.xlu0 }
 0x294   : > { %1359 = vmatmul.mubr.msk.bf16.vlgmr.msra.gmra.mrb[0].mxu1 %vm543_vm3, %v535_v43  ;;  %v329_v43 = vld [vmem:[%s1733_s4 + $0x48] sm:$0xff] }
 0x295   : > { %1364 = vmatprep.mubr.msk.bf16.mxu1 %vm1476_vm1, %v1475_v25 }
 0x367   : > { %v585_v44 = vpop.f32.mrb[0].mxu1 }
 0x368   : > { %v1360_v45 = vpop.f32.mrb[1].mxu1  ;;  %v591_v46 = vsel %vm543_vm3, %v585_v44, -inf }
 0x369   : > { %592 = vmax.xlane.f32.xlu1 %v591_v46  ;;  %v588_v47 = vpop.f32.mrb[2].mxu1 }
 0x36a   : > { %v1361_v48 = vpop.f32.mrb[3].mxu1 }
 0x37a   : > { %339 = vperm.xlu1 %1440, %v321_v49  }
 0x37e   : > { %374 = vperm.xlu1 %1440, %v328_v50  }
 0x382   : > { %359 = vperm.xlu1 %1440, %v325_v53  }
 0x3f6   : > { %v593_v54 = vpop.xlane.xlu1 %592 }
 0x3f7   : > { %v594_v55 = vsub.f32 %v585_v44, %v593_v54  ;;  %v775_v44 = vld [vmem:[%s1734_s5 + $0x4] sm:$0xf]  ;;  %v650_v54 = vld [vmem:[%s1734_s5] sm:$0xf] }
 0x3f8   : > { %v780_v45 = vsel %vm547_vm2, %v775_v44, 0 }
 0x3f9   : > { %v595_v56 = vmul.f32 1.442695, %v594_v55  ;;  %1381 = vmatpush3.bf16.msra.mxu0 %v780_v45 }
 0x3fa   : > { %v340_v57 = vpop.permute.xlu1 %339  ;;  %1392 = vmatprep.subr.bf16.mxu0 %v1475_v25 }
 0x3fb   : > { %1450 = vpow2.f32 %v595_v56  ;;  %v481_v3 = vadd.f32 %v480_v33, %v340_v57  ;;  %v826_v57 = vsel %vm547_vm2, %v650_v54, 0 }
 0x3fd   : > { %v651_v4 = vpack.c.bf16 %v481_v3, %v481_v3 }
 0x3fe   : > { %v375_v58 = vpop.permute.xlu1 %374 }
 0x3ff   : > { %v510_v59 = vadd.f32 %v509_v52, %v375_v58 }
 0x401   : > { %v526_v60 = vpack.c.bf16 %v510_v59, %v510_v59 }
 0x402   : > { %v360_v8 = vpop.permute.xlu1 %359 }
 0x403   : > { %v607_v61 = vsel %vm543_vm3, %v526_v60, 0  ;;  %v497_v10 = vadd.f32 %v496_v40, %v360_v8 }
 0x404   : > { %1363 = vmatpush3.bf16.xpose.msra.mxu1 %v607_v61 }
 0x405   : > { %v1451_v62 = vpop.eup %1450  ;;  %1368 = vmatprep.subr.bf16.mxu1 %v1475_v25  ;;  %v652_v12 = vpack.c.bf16 %v497_v10, %v497_v10 }
 0x406   : > { %v597_v63 = vsel %vm543_vm3, %v1451_v62, 0.0 }
 0x407   : > { %598 = vadd.xlane.f32.xlu0 %v597_v63  ;;  %v674_v15 = vsel %vm547_vm2, %v652_v12, 0 }
 0x434   : > { %654 = vxpose.xlu0.c.b16.start.end [1/1] (short) (narrow) %v651_v4, 16 }
 0x43d   : > { %1441 = vset.pattern.permute.xlu0 %v1474_v9 }
 0x43e   : > { %344 = vperm.xlu0 %1441, %v322_v5  }
 0x442   : > { %364 = vperm.xlu0 %1441, %v326_v6  }
 0x494   : > { %v599_v7 = vpop.xlane.xlu0 %598 }
 0x495   : > { %1452 = vrcp.f32 %v599_v7 }
 0x49a   : > { %v662_v9 = vpop.trf.xlu0 }
 0x49f   : > { %v1453_v11 = vpop.eup %1452 }
 0x4a0   : > { %v601_v13 = vmul.f32 %v1453_v11, %v1451_v62 }
 0x4a2   : > { %v602_v14 = vpack.c.bf16 %v601_v13, %v601_v13 }
 0x4a4   : > { %1365 = vmatmul.mubr.msk.bf16.vlgmr.msra.gmra.mrb[4].mxu1 %vm543_vm3, %v602_v14 }
 0x4a5   : > { %1369 = vmatpush3.bf16.msra.mxu1 %v674_v15  ;;  %1370 = vmatprep.mubr.msk.bf16.mxu1 %vm1476_vm1, %v1475_v25 }
 0x4a6   : > { %1374 = vmatprep.subr.bf16.mxu1 %v1475_v25 }
 0x4ac   : > { %1371 = vmatmul.mubr.msk.bf16.vlgmr.msra.gmra.mrb[8].mxu1 %vm543_vm3, %v662_v9 }
 0x4ad   : > { %1376 = vmatprep.mubr.msk.bf16.mxu1 %vm1476_vm1, %v1475_v25 }
 0x4bd   : > { %v345_v16 = vpop.permute.xlu0 %344 }
 0x4be   : > { %v486_v17 = vadd.f32 %v1584_v28, %v345_v16 }
 0x4c0   : > { %v868_v18 = vpack.c.bf16 %v486_v17, %v486_v17 }
 0x4c1   : > { %v365_v21 = vpop.permute.xlu0 %364 }
 0x4c2   : > { %871 = vxpose.xlu0.c.b16.start.end [1/1] (short) (narrow) %v868_v18, 16 }
 0x4cb   : > { %349 = vperm.xlu0 %1441, %v323_v19  }
 0x4cf   : > { %384 = vperm.xlu0 %1441, %v330_v20  }
 0x528   : > { %v1638_v22 = vpop.trf.xlu0 }
 0x54a   : > { %v350_v23 = vpop.permute.xlu0 %349 }
 0x54b   : > { %v489_v24 = vadd.f32 %v1586_v32, %v350_v23 }
 0x54d   : > { %v1040_v26 = vpack.c.bf16 %v489_v24, %v489_v24 }
 0x54e   : > { %v385_v56 = vpop.permute.xlu0 %384 }
 0x54f   : > { %1043 = vxpose.xlu0.c.b16.start.end [1/1] (short) (narrow) %v1040_v26, 16  ;;  %v518_v58 = vadd.f32 %v1604_v51, %v385_v56  ;;  %v502_v51 = vadd.f32 %v1588_v35, %v365_v21  ;;  %v327_v26 = vld [vmem:[%s1733_s4 + $0x38] sm:$0xff] }
 0x551   : > { %v870_v59 = vpack.c.bf16 %v518_v58, %v518_v58  ;;  %v869_v62 = vpack.c.bf16 %v502_v51, %v502_v51 }
 0x553   : > { %v949_v61 = vsel %vm543_vm3, %v870_v59, 0  ;;  %v891_v5 = vsel %vm547_vm2, %v869_v62, 0 }
 0x577   : > { %v643_v27 = vpop.f32.mrb[4].mxu1 }
 0x578   : > { %v1366_v28 = vpop.f32.mrb[5].mxu1  ;;  %v649_v60 = vpack.c.bf16 %v643_v27, %v643_v27 }
 0x579   : > { %v646_v29 = vpop.f32.mrb[6].mxu1 }
 0x57a   : > { %v1367_v30 = vpop.f32.mrb[7].mxu1 }
 0x57f   : > { %v710_v31 = vpop.f32.mrb[8].mxu1 }
 0x580   : > { %v1372_v33 = vpop.f32.mrb[9].mxu1  ;;  %v716_v34 = vsel %vm543_vm3, %v710_v31, -inf }
 0x581   : > { %717 = vmax.xlane.f32.xlu1 %v716_v34  ;;  %v713_v36 = vpop.f32.mrb[10].mxu1 }
 0x582   : > { %v1373_v37 = vpop.f32.mrb[11].mxu1 }
 0x5b5   : > { %v1051_v37 = vpop.trf.xlu0 }
 0x60e   : > { %v718_v38 = vpop.xlane.xlu1 %717 }
 0x60f   : > { %v719_v40 = vsub.f32 %v710_v31, %v718_v38 }
 0x611   : > { %v720_v41 = vmul.f32 1.442695, %v719_v40 }
 0x613   : > { %1454 = vpow2.f32 %v720_v41 }
 0x61d   : > { %v1455_v42 = vpop.eup %1454 }
 0x61e   : > { %v722_v32 = vsel %vm543_vm3, %v1455_v42, 0.0 }
 0x61f   : > { %723 = vadd.xlane.f32.xlu1 %v722_v32 }
 0x630   : > { %379 = vperm.xlu1 %1440, %v329_v43  }
 0x6ac   : > { %v724_v46 = vpop.xlane.xlu1 %723 }
 0x6ad   : > { %1456 = vrcp.f32 %v724_v46 }
 0x6b0   : > { %v380_v47 = vpop.permute.xlu1 %379 }
 0x6b1   : > { %v513_v48 = vadd.f32 %v1614_v2, %v380_v47 }
 0x6b3   : > { %v653_v49 = vpack.c.bf16 %v513_v48, %v513_v48 }
 0x6b5   : > { %v732_v50 = vsel %vm543_vm3, %v653_v49, 0 }
 0x6b6   : > { %1375 = vmatpush3.bf16.xpose.msra.mxu1 %v732_v50 }
 0x6b7   : > { %v1457_v52 = vpop.eup %1456  ;;  %1386 = vmatprep.subr.bf16.mxu1 %v1475_v25 }
 0x6b8   : > { %v726_v53 = vmul.f32 %v1457_v52, %v1455_v42 }
 0x6ba   : > { %v727_v55 = vpack.c.bf16 %v726_v53, %v726_v53 }
 0x6bd   : > { %1377 = vmatmul.mubr.msk.bf16.vlgmr.msra.gmra.mrb[12].mxu1 %vm543_vm3, %v727_v55  ;;  %v331_v55 = vld [vmem:[%s1733_s4 + $0x58] sm:$0xff] }
 0x6be   : > { %1387 = vmatpush3.bf16.msra.mxu1 %v826_v57  ;;  %1388 = vmatprep.mubr.msk.bf16.mxu1 %vm1476_vm1, %v1475_v25 }
 0x6bf   : > { %1398 = vmatprep.subr.bf16.mxu1 %v1475_v25 }
 0x6c5   : > { %1389 = vmatmul.mubr.msk.bf16.vlgmr.msra.gmra.mrb[16].mxu1 %vm543_vm3, %v649_v60 }
 0x6c6   : > { %1400 = vmatprep.mubr.msk.bf16.mxu1 %vm1476_vm1, %v1475_v25 }
 0x6c7   : > { %1399 = vmatpush3.bf16.xpose.msra.mxu1 %v949_v61 }
 0x6c8   : > { %1410 = vmatprep.subr.bf16.mxu1 %v1475_v25 }
 0x790   : > { %v768_v63 = vpop.f32.mrb[12].mxu1 }
 0x791   : > { %v774_v2 = vpack.c.bf16 %v768_v63, %v768_v63  ;;  %v1378_v3 = vpop.f32.mrb[13].mxu1 }
 0x792   : > { %v771_v4 = vpop.f32.mrb[14].mxu1 }
 0x793   : > { %v1379_v6 = vpop.f32.mrb[15].mxu1  ;;  %1383 = vmatmul.mubr.msk.bf16.vlgmr.msra.gmra.mrb[12].mxu0 %vm543_vm3, %v774_v2 }
 0x794   : > { %1393 = vmatpush3.bf16.msra.mxu0 %v891_v5  ;;  %1394 = vmatprep.mubr.msk.bf16.mxu0 %vm1476_vm1, %v1475_v25 }
 0x795   : > { %1404 = vmatprep.subr.bf16.mxu0 %v1475_v25 }
 0x798   : > { %v862_v7 = vpop.f32.mrb[16].mxu1 }
 0x799   : > { %v1390_v8 = vpop.f32.mrb[17].mxu1 }
 0x79a   : > { %v865_v10 = vpop.f32.mrb[18].mxu1 }
 0x79b   : > { %v1391_v35 = vpop.f32.mrb[19].mxu1  ;;  %1395 = vmatmul.mubr.msk.bf16.vlgmr.msra.gmra.mrb[16].mxu0 %vm543_vm3, %v1638_v22 }
 0x79c   : > { %1406 = vmatprep.mubr.msk.bf16.mxu0 %vm1476_vm1, %v1475_v25 }
 0x866   : > { %v816_v11 = vpop.f32.mrb[12].mxu0 }
 0x867   : > { %v1678_v12 = vadd.f32 %v862_v7, %v816_v11  ;;  %v1384_v13 = vpop.f32.mrb[13].mxu0 }
 0x868   : > { %v819_v14 = vpop.f32.mrb[14].mxu0 }
 0x869   : > { %v1385_v15 = vpop.f32.mrb[15].mxu0  ;;  %v1308_v14 = vld [vmem:[%s1735_s6] ss:$0 sm:$0xff] }
 0x86e   : > { %v927_v9 = vpop.f32.mrb[16].mxu0 }
 0x86f   : > { %v1396_v16 = vpop.f32.mrb[17].mxu0  ;;  %v933_v17 = vsel %vm543_vm3, %v927_v9, -inf }
 0x870   : > { %934 = vmax.xlane.f32.xlu1 %v933_v17  ;;  %v930_v18 = vpop.f32.mrb[18].mxu0 }
 0x871   : > { %v1397_v19 = vpop.f32.mrb[19].mxu0 }
 0x8fd   : > { %v935_v20 = vpop.xlane.xlu1 %934 }
 0x8fe   : > { %v936_v21 = vsub.f32 %v927_v9, %v935_v20 }
 0x900   : > { %v937_v23 = vmul.f32 1.442695, %v936_v21 }
 0x902   : > { %1458 = vpow2.f32 %v937_v23 }
 0x90c   : > { %v1459_v22 = vpop.eup %1458 }
 0x90d   : > { %v939_v24 = vsel %vm543_vm3, %v1459_v22, 0.0 }
 0x90e   : > { %940 = vadd.xlane.f32.xlu1 %v939_v24 }
 0x91f   : > { %369 = vperm.xlu1 %1440, %v327_v26  }
 0x99b   : > { %v941_v27 = vpop.xlane.xlu1 %940 }
 0x99c   : > { %1460 = vrcp.f32 %v941_v27 }
 0x99f   : > { %v370_v28 = vpop.permute.xlu1 %369 }
 0x9a0   : > { %v505_v29 = vadd.f32 %v1590_v39, %v370_v28  ;;  %v992_v39 = vld [vmem:[%s1734_s5 + $0x8] sm:$0xf] }
 0x9a1   : > { %v997_v38 = vsel %vm547_vm2, %v992_v39, 0 }
 0x9a2   : > { %v1041_v33 = vpack.c.bf16 %v505_v29, %v505_v29  ;;  %1405 = vmatpush3.bf16.msra.mxu0 %v997_v38 }
 0x9a3   : > { %1416 = vmatprep.subr.bf16.mxu0 %v1475_v25 }
 0x9a4   : > { %v1063_v36 = vsel %vm547_vm2, %v1041_v33, 0 }
 0x9a6   : > { %v1461_v30 = vpop.eup %1460 }
 0x9a7   : > { %v943_v31 = vmul.f32 %v1461_v30, %v1459_v22 }
 0x9a9   : > { %v944_v34 = vpack.c.bf16 %v943_v31, %v943_v31 }
 0x9ab   : > { %1401 = vmatmul.mubr.msk.bf16.vlgmr.msra.gmra.mrb[20].mxu1 %vm543_vm3, %v944_v34 }
 0x9ac   : > { %1411 = vmatpush3.bf16.msra.mxu1 %v1063_v36  ;;  %1412 = vmatprep.mubr.msk.bf16.mxu1 %vm1476_vm1, %v1475_v25 }
 0x9ad   : > { %1422 = vmatprep.subr.bf16.mxu1 %v1475_v25 }
 0x9b3   : > { %1413 = vmatmul.mubr.msk.bf16.vlgmr.msra.gmra.mrb[24].mxu1 %vm543_vm3, %v1051_v37 }
 0x9b4   : > { %1424 = vmatprep.mubr.msk.bf16.mxu1 %vm1476_vm1, %v1475_v25 }
 0xa7e   : > { %v985_v40 = vpop.f32.mrb[20].mxu1 }
 0xa7f   : > { %v991_v41 = vpack.c.bf16 %v985_v40, %v985_v40  ;;  %v1402_v42 = vpop.f32.mrb[21].mxu1 }
 0xa80   : > { %v988_v32 = vpop.f32.mrb[22].mxu1 }
 0xa81   : > { %v1403_v43 = vpop.f32.mrb[23].mxu1  ;;  %1407 = vmatmul.mubr.msk.bf16.vlgmr.msra.gmra.mrb[20].mxu0 %vm543_vm3, %v991_v41 }
 0xa82   : > { %1418 = vmatprep.mubr.msk.bf16.mxu0 %vm1476_vm1, %v1475_v25  ;;  %v1164_v25 = vld [vmem:[%s1734_s5 + $0xc] sm:$0xf] }
 0xa83   : > { %v1169_v56 = vsel %vm547_vm2, %v1164_v25, 0 }
 0xa84   : > { %1423 = vmatpush3.bf16.msra.mxu1 %v1169_v56 }
 0xa86   : > { %v1099_v44 = vpop.f32.mrb[24].mxu1 }
 0xa87   : > { %v1414_v45 = vpop.f32.mrb[25].mxu1  ;;  %v1105_v46 = vsel %vm543_vm3, %v1099_v44, -inf }
 0xa88   : > { %1106 = vmax.xlane.f32.xlu1 %v1105_v46  ;;  %v1102_v47 = vpop.f32.mrb[26].mxu1 }
 0xa89   : > { %v1415_v48 = vpop.f32.mrb[27].mxu1 }
 0xb15   : > { %v1107_v49 = vpop.xlane.xlu1 %1106 }
 0xb16   : > { %v1108_v50 = vsub.f32 %v1099_v44, %v1107_v49 }
 0xb18   : > { %v1109_v52 = vmul.f32 1.442695, %v1108_v50 }
 0xb1a   : > { %1462 = vpow2.f32 %v1109_v52 }
 0xb24   : > { %v1463_v53 = vpop.eup %1462 }
 0xb25   : > { %v1111_v54 = vsel %vm543_vm3, %v1463_v53, 0.0 }
 0xb26   : > { %1112 = vadd.xlane.f32.xlu0 %v1111_v54 }
 0xb3c   : > { %389 = vperm.xlu0 %1441, %v331_v55  }
 0xb54   : > { %v1033_v57 = vpop.f32.mrb[20].mxu0 }
 0xb55   : > { %v1039_v58 = vadd.f32 %v1033_v57, %v1678_v12  ;;  %v1408_v59 = vpop.f32.mrb[21].mxu0 }
 0xb56   : > { %v1036_v60 = vpop.f32.mrb[22].mxu0 }
 0xb57   : > { %v1409_v61 = vpop.f32.mrb[23].mxu0 }
 0xbb3   : > { %v1113_v51 = vpop.xlane.xlu0 %1112 }
 0xbb4   : > { %1464 = vrcp.f32 %v1113_v51 }
 0xbbb   : > { %v390_v62 = vpop.permute.xlu0 %389 }
 0xbbc   : > { %v521_v63 = vadd.f32 %v1612_v1, %v390_v62 }
 0xbbe   : > { %v1042_v2 = vpack.c.bf16 %v521_v63, %v521_v63  ;;  %v1465_v3 = vpop.eup %1464 }
 0xbbf   : > { %v1115_v5 = vmul.f32 %v1465_v3, %v1463_v53 }
 0xbc0   : > { %v1121_v4 = vsel %vm543_vm3, %v1042_v2, 0 }
 0xbc1   : > { %1417 = vmatpush3.bf16.xpose.msra.mxu0 %v1121_v4  ;;  %v1116_v6 = vpack.c.bf16 %v1115_v5, %v1115_v5 }
 0xbc8   : > { %1419 = vmatmul.mubr.msk.bf16.vlgmr.msra.gmra.mrb[24].mxu0 %vm543_vm3, %v1116_v6 }
 0xc9b   : > { %v1157_v7 = vpop.f32.mrb[24].mxu0 }
 0xc9c   : > { %v1163_v8 = vpack.c.bf16 %v1157_v7, %v1157_v7  ;;  %v1420_v10 = vpop.f32.mrb[25].mxu0 }
 0xc9d   : > { %v1160_v35 = vpop.f32.mrb[26].mxu0 }
 0xc9e   : > { %v1421_v11 = vpop.f32.mrb[27].mxu0  ;;  %1425 = vmatmul.mubr.msk.bf16.vlgmr.msra.gmra.mrb[28].mxu1 %vm543_vm3, %v1163_v8 }
 0xd71   : > { %v1205_v12 = vpop.f32.mrb[28].mxu1 }
 0xd72   : > { %v1211_v13 = vadd.f32 %v1205_v12, %v1039_v58  ;;  %v1426_v1 = vpop.f32.mrb[29].mxu1 }
 0xd73   : > { %v1208_v15 = vpop.f32.mrb[30].mxu1 }
 0xd74   : > { %v1212_v9 = vadd.f32 %v1211_v13, %v1533_v0  ;;  %v1427_v16 = vpop.f32.mrb[31].mxu1 }
 0xd76   : > { %v1220_v17 = vadd.f32 %v1308_v14, %v1212_v9 }
 0xd78   : > { %1221 = vst.msk [vmem:[%s273_s19] sm:$0xff] %vm278_vm0, %v1220_v17 }
 0xd79 PF: > { %s17_s24 = sadd.s32 1, %s1472_s24  }
 0xd7a   : > { %p14_p4 = scmp.ge.s32.totalorder %s17_s24, 4  }
 0xd7c   :  { %16 = sbr.rel (!%p14_p4) target bundleno = 1 (0x1), region = 78 }

// kernel: transformer_decoder.7
= control target key start
LH: loop header
LB: loop body
LE: loop exit
PB: predicated region body
PF: predicated region fallthrough
CT: control target
= control target key end

     0   :  { %s1704_s13 = smov 0   ;;  %s1917_s0 = inlined_call_operand.vmem [shape: f32[2,8,32], index: 0, kind: input, shape index: {}]   ;;  %s1918_s1 = inlined_call_operand.vmem [shape: bf16[2,16,32], index: 1, kind: input, shape index: {}]   ;;  %s1919_s2 = inlined_call_operand.vmem [shape: f32[1,32], index: 2, kind: input, shape index: {}]   ;;  %s1920_s3 = inlined_call_operand.vmem [shape: f32[1,32], index: 3, kind: input, shape index: {}]   ;;  %s1921_s4 = inlined_call_operand.vmem [shape: bf16[32,32], index: 4, kind: input, shape index: {}]   ;;  %s1922_s5 = inlined_call_operand.vmem [shape: f32[32,1], index: 5, kind: input, shape index: {}]   ;;  %s1923_s6 = inlined_call_operand.vmem [shape: bf16[64,32], index: 6, kind: input, shape index: {}]   ;;  %s1924_s7 = inlined_call_operand.vmem [shape: f32[64,1], index: 7, kind: input, shape index: {}]   ;;  %s1925_s8 = inlined_call_operand.vmem [shape: bf16[32,32], index: 8, kind: input, shape index: {}]   ;;  %s1926_s9 = inlined_call_operand.vmem [shape: f32[1,32], index: 9, kind: input, shape index: {}]   ;;  %s1927_s10 = inlined_call_operand.vmem [shape: f32[2,8,32], index: 10, kind: output, shape index: {}]  }
   0x1 LB: > { %s1436_s14 = sadd.s32 4294967295, %s1643_s13   ;;  %p1440_p0 = scmp.ge.s32.totalorder %s1643_s13, 1  ;;  %s1643_s13 = sphi %s1704_s13, %s20_s13  }
   0x2   : > { %p321_p1 = scmp.lt.s32.totalorder %s1643_s13, 3 }
   0x4   : > { %p322_p2 = pnand %p1440_p0, %p321_p1 }
   0x5   : > { %p362_p3 = scmp.lt.s32.totalorder (!%p322_p2), %s1436_s14, 1  ;;  %vm381_vm0 = vcmask (!%p322_p2), 261120   ;;  %v1613_v9 = vld [vmem:[%s1923_s6] sm:$0xff] (!%p322_p2)   ;;  %v1614_v10 = vld [vmem:[%s1923_s6 + $0x8] sm:$0xff] (!%p322_p2)   ;;  %v1645_v13 = vmov (!%p322_p2), 0   ;;  %vm695_vm1 = vcmask (!%p322_p2), 1043456   ;;  %v668_v60 = vlaneseq (!%p322_p2) }
   0x6   : > { %325 = sbr.rel (%p322_p2) target bundleno = 2927 (0xb6f), region = 60  ;;  %v1615_v11 = vld [vmem:[%s1921_s4] sm:$0xff] (!%p322_p2)   ;;  %1516 = vmatprep.mubr.msk.bf16.mxu1 (!%p322_p2), %vm381_vm0, %v1613_v9  ;;  %1610 = vset.pattern.permute.xlu1 (!%p322_p2), %v1645_v13  ;;  %v416_v15 = vld [vmem:[%s1922_s5 + $0x8] sm:$0xff] (!%p322_p2)  ;;  %v1646_v39 = vmov (!%p322_p2), 0.0   ;;  %v1617_v41 = vld [vmem:[%s1923_s6 + $0x10] sm:$0xff] (!%p322_p2)   ;;  %vm1647_vm2 = vmmov (!%p322_p2), 0  }
   0x7   : > { %1510 = vmatprep.mubr.msk.bf16.mxu0 (!%p322_p2), %vm381_vm0, %v1615_v11  ;;  %v415_v12 = vld [vmem:[%s1922_s5] sm:$0xff] (!%p322_p2)  ;;  %1611 = vset.pattern.permute.xlu0 (!%p322_p2), %v1645_v13  ;;  %v516_v16 = vld [vmem:[%s1924_s7 + $0x8] sm:$0xff] (!%p322_p2)  ;;  %v1618_v42 = vld [vmem:[%s1923_s6 + $0x18] sm:$0xff] (!%p322_p2)   ;;  %vm691_vm3 = vcmask (!%p322_p2), 64512   ;;  %v669_v61 = vand.u32 (!%p322_p2), 127, %v668_v60  ;;  %vm739_vm5 = vcmask (!%p322_p2), 130048  }
   0x8   : > { %v515_v14 = vld [vmem:[%s1924_s7] sm:$0xff] (!%p322_p2)  ;;  %421 = vperm.xlu1 (!%p322_p2), %1610, %v415_v12   ;;  %v1616_v28 = vld [vmem:[%s1921_s4 + $0x8] sm:$0xff] (!%p322_p2)   ;;  %v1648_v62 = vmov (!%p322_p2), -1e+09  }
   0x9   : > { %v1445_v21 = vld [vmem:[%s1919_s2] ss:$0 sm:$0xff] (!%p322_p2)  ;;  %vm670_vm4 = vcmp.lt.s32.totalorder (!%p322_p2), %v669_v61, 10  ;;  %v520_v13 = vld [vmem:[%s1924_s7 + $0x28] sm:$0xff] (!%p322_p2) }
   0xa   : > { %v1446_v23 = vld [vmem:[%s1920_s3] ss:$0 sm:$0xff] (!%p322_p2)  ;;  %v1802_v63 = vsel (!%p322_p2), %vm670_vm4, 0.0, %v1648_v62 }
   0xc   : > { %426 = vperm.xlu1 (!%p322_p2), %1610, %v416_v15  }
   0xd   : > { %s1929_s14 = smov (!%p362_p3, %s1436_s14), 1 }
   0xe   : > { %s1712_s15 = sshll.u32 %s1929_s14, 3 }
   0xf   : > { %s365_s18 = scalar_lea.vmem %s1917_s0, %s1712_s15  ;;  %s370_s21 = scalar_lea.vmem %s1918_s1, %s1712_s15 }
  0x10   : > { %v1718_v0 = vld [vmem:[%s365_s18] sm:$0xff]  ;;  %530 = vperm.xlu1 %1610, %v516_v16   ;;  %s374_s20 = scalar_lea.vmem %s1927_s10, %s1712_s15 }
  0x11   : > { %v382_v1 = vsel %vm381_vm0, %v1718_v0, 0.0  ;;  %v1612_v7 = vld [vmem:[%s370_s21] sm:$0xff]  }
  0x12   : > { %383 = vadd.xlane.f32.xlu0 %v382_v1  ;;  %1597 = vmatprep.subr.msk.bf16.mxu1 %vm381_vm0, %v1612_v7  ;;  %v601_v8 = vsel %vm381_vm0, %v1612_v7, 0 }
  0x13   : > { %1515 = vmatpush3.bf16.xpose.msra.mxu1 %v601_v8 }
  0x14   : > { %1536 = vmatprep.subr.bf16.mxu1 %v1646_v39 }
  0x1a   : > { %1517 = vmatmul.mubr.msk.bf16.vlgmr.msra.gmra.mrb[0].mxu1 %vm381_vm0, %v1614_v10 }
  0x1b   : > { %1520 = vmatprep.mubr.msk.bf16.mxu1 %vm381_vm0, %v1617_v41 }
  0x22   : > { %1521 = vmatmul.mubr.msk.bf16.gmra.mrb[4].mxu1 %vm381_vm0, %v1618_v42 }
  0x23   : > { %1538 = vmatprep.mubr.msk.bf16.mxu1 %vm1647_vm2, %v1646_v39 }
  0x87   : > { %v422_v29 = vpop.permute.xlu1 %421 }
  0x8b   : > { %v427_v30 = vpop.permute.xlu1 %426 }
  0x8f   : > { %v531_v34 = vpop.permute.xlu1 %530 }
  0x9f   : > { %v384_v2 = vpop.xlane.xlu0 %383 }
  0xa0   : > { %v386_v3 = vmul.f32 0.03125, %v384_v2 }
  0xa2   : > { %v387_v4 = vsub.f32 %v1718_v0, %v386_v3 }
  0xa4   : > { %v388_v5 = vmul.f32 %v387_v4, %v387_v4 }
  0xa6   : > { %v389_v6 = vsel %vm381_vm0, %v388_v5, 0.0 }
  0xa7   : > { %390 = vadd.xlane.f32.xlu0 %v389_v6 }
  0xbd   : > { %525 = vperm.xlu0 %1611, %v515_v14  }
  0xed   : > { %v1766_v31 = vpop.f32.mrb[0].mxu1 }
  0xee   : > { %v637_v32 = vpop.f32.mrb[1].mxu1 }
  0xef   : > { %v1768_v33 = vpop.f32.mrb[2].mxu1 }
  0xf0   : > { %v640_v35 = vpop.f32.mrb[3].mxu1 }
  0xf1   : > { %v641_v36 = vadd.f32 %v640_v35, %v531_v34 }
  0xf3   : > { %v801_v37 = vpack.c.bf16 %v641_v36, %v641_v36 }
  0xf5   : > { %v823_v38 = vsel %vm695_vm1, %v801_v37, 0  ;;  %v1792_v54 = vpop.f32.mrb[4].mxu1 }
  0xf6   : > { %1537 = vmatpush3.bf16.msra.mxu1 %v823_v38  ;;  %v653_v55 = vpop.f32.mrb[5].mxu1 }
  0xf7   : > { %1548 = vmatprep.subr.bf16.mxu1 %v1646_v39  ;;  %v1794_v56 = vpop.f32.mrb[6].mxu1 }
  0xf8   : > { %v656_v57 = vpop.f32.mrb[7].mxu1 }
 0x134   : > { %v391_v17 = vpop.xlane.xlu0 %390 }
 0x135   : > { %v392_v18 = vmul.f32 0.03125, %v391_v17 }
 0x137   : > { %v393_v19 = vadd.f32 1e-05, %v392_v18 }
 0x139   : > { %1619 = vrsqrt.f32 %v393_v19 }
 0x13c   : > { %v526_v40 = vpop.permute.xlu0 %525 }
 0x13d   : > { %v638_v43 = vadd.f32 %v637_v32, %v526_v40 }
 0x13f   : > { %v673_v44 = vpack.c.bf16 %v638_v43, %v638_v43 }
 0x141   : > { %v697_v45 = vsel %vm695_vm1, %v673_v44, 0  ;;  %v418_v44 = vld [vmem:[%s1922_s5 + $0x18] sm:$0xff] }
 0x143   : > { %v1620_v20 = vpop.eup %1619 }
 0x144   : > { %v395_v22 = vmul.f32 %v1620_v20, %v387_v4 }
 0x146   : > { %v402_v24 = vmul.f32 %v1445_v21, %v395_v22 }
 0x148   : > { %v409_v25 = vadd.f32 %v1446_v23, %v402_v24  ;;  %v519_v24 = vld [vmem:[%s1924_s7 + $0x20] sm:$0xff] }
 0x14a   : > { %v414_v26 = vpack.c.bf16 %v409_v25, %v409_v25  ;;  %v417_v25 = vld [vmem:[%s1922_s5 + $0x10] sm:$0xff] }
 0x14c   : > { %1596 = vmatprep.subr.msk.bf16.mxu0 %vm381_vm0, %v414_v26  ;;  %v456_v27 = vsel %vm381_vm0, %v414_v26, 0  ;;  %v517_v26 = vld [vmem:[%s1924_s7 + $0x10] sm:$0xff] }
 0x14d   : > { %1509 = vmatpush3.bf16.xpose.msra.mxu0 %v456_v27 }
 0x14e   : > { %1524 = vmatprep.subr.bf16.mxu0 %v1646_v39 }
 0x154   : > { %1511 = vmatmul.mubr.msk.bf16.vlgmr.msra.gmra.mrb[0].mxu0 %vm381_vm0, %v1616_v28 }
 0x155   : > { %1526 = vmatprep.mubr.msk.bf16.mxu0 %vm1647_vm2, %v1646_v39  ;;  %1525 = vmatpush3.bf16.msra.mxu0 %v697_v45 }
 0x156   : > { %1530 = vmatprep.subr.bf16.mxu0 %v1646_v39 }
 0x227   : > { %v1788_v46 = vpop.f32.mrb[0].mxu0 }
 0x228   : > { %v492_v47 = vpop.f32.mrb[1].mxu0 }
 0x229   : > { %v493_v48 = vadd.f32 %v492_v47, %v422_v29  ;;  %v1790_v49 = vpop.f32.mrb[2].mxu0 }
 0x22a   : > { %v495_v50 = vpop.f32.mrb[3].mxu0 }
 0x22b   : > { %v672_v51 = vpack.c.bf16 %v493_v48, %v493_v48  ;;  %v496_v52 = vadd.f32 %v495_v50, %v427_v30 }
 0x22d   : > { %675 = vxpose.xlu1.c.b16.start.end [1/1] (short) (narrow) %v672_v51, 16  ;;  %v800_v53 = vpack.c.bf16 %v496_v52, %v496_v52  ;;  %v799_v52 = vld [vmem:[%s1925_s8] sm:$0xf] }
 0x231   : > { %803 = vxpose.xlu1.c.b16.start.end [1/1] (short) (narrow) %v800_v53, 16  ;;  %v975_v53 = vsel %vm695_vm1, %v799_v52, 0 }
 0x293   : > { %v683_v58 = vpop.trf.xlu1 }
 0x294   : > { %1527 = vmatmul.mubr.msk.bf16.vlgmr.msra.gmra.mrb[4].mxu0 %vm691_vm3, %v683_v58 }
 0x295   : > { %1532 = vmatprep.mubr.msk.bf16.mxu0 %vm1647_vm2, %v1646_v39 }
 0x297   : > { %v811_v59 = vpop.trf.xlu1 }
 0x298   : > { %1539 = vmatmul.mubr.msk.bf16.vlgmr.msra.gmra.mrb[8].mxu1 %vm691_vm3, %v811_v59 }
 0x299   : > { %1550 = vmatprep.mubr.msk.bf16.mxu1 %vm1647_vm2, %v1646_v39 }
 0x367   : > { %v733_v1 = vpop.f32.mrb[4].mxu0 }
 0x368   : > { %v734_v2 = vadd.f32 %v733_v1, %v1802_v63  ;;  %v1528_v3 = vpop.f32.mrb[5].mxu0 }
 0x369   : > { %v736_v4 = vpop.f32.mrb[6].mxu0 }
 0x36a   : > { %v1529_v5 = vpop.f32.mrb[7].mxu0  ;;  %v740_v6 = vsel %vm739_vm5, %v734_v2, -inf }
 0x36b   : > { %v859_v7 = vpop.f32.mrb[8].mxu1  ;;  %741 = vmax.xlane.f32.xlu1 %v740_v6 }
 0x36c   : > { %v860_v8 = vadd.f32 %v859_v7, %v1802_v63  ;;  %v1540_v9 = vpop.f32.mrb[9].mxu1 }
 0x36d   : > { %v862_v10 = vpop.f32.mrb[10].mxu1 }
 0x36e   : > { %v1541_v11 = vpop.f32.mrb[11].mxu1  ;;  %v865_v12 = vsel %vm739_vm5, %v860_v8, -inf }
 0x36f   : > { %866 = vmax.xlane.f32.xlu0 %v865_v12 }
 0x385   : > { %550 = vperm.xlu0 %1611, %v520_v13  }
 0x3f8   : > { %v742_v14 = vpop.xlane.xlu1 %741 }
 0x3f9   : > { %v743_v15 = vsub.f32 %v734_v2, %v742_v14 }
 0x3fb   : > { %v744_v16 = vmul.f32 1.442695, %v743_v15 }
 0x3fc   : > { %v867_v17 = vpop.xlane.xlu0 %866 }
 0x3fd   : > { %1621 = vpow2.f32 %v744_v16  ;;  %v868_v18 = vsub.f32 %v860_v8, %v867_v17 }
 0x3ff   : > { %v869_v19 = vmul.f32 1.442695, %v868_v18 }
 0x401   : > { %1623 = vpow2.f32 %v869_v19 }
 0x404   : > { %v551_v32 = vpop.permute.xlu0 %550 }
 0x405   : > { %v657_v37 = vadd.f32 %v656_v57, %v551_v32 }
 0x407   : > { %v1622_v20 = vpop.eup %1621  ;;  %v802_v43 = vpack.c.bf16 %v657_v37, %v657_v37  ;;  %v518_v37 = vld [vmem:[%s1924_s7 + $0x18] sm:$0xff] }
 0x408   : > { %v746_v21 = vsel %vm739_vm5, %v1622_v20, 0.0 }
 0x409   : > { %747 = vadd.xlane.f32.xlu1 %v746_v21  ;;  %v881_v48 = vsel %vm739_vm5, %v802_v43, 0 }
 0x40b   : > { %v1624_v22 = vpop.eup %1623 }
 0x40c   : > { %v871_v23 = vsel %vm739_vm5, %v1624_v22, 0.0 }
 0x40d   : > { %872 = vadd.xlane.f32.xlu1 %v871_v23 }
 0x41e   : > { %545 = vperm.xlu1 %1610, %v519_v24  }
 0x422   : > { %431 = vperm.xlu1 %1610, %v417_v25  }
 0x426   : > { %535 = vperm.xlu1 %1610, %v517_v26  }
 0x496   : > { %v748_v27 = vpop.xlane.xlu1 %747 }
 0x497   : > { %1625 = vrcp.f32 %v748_v27 }
 0x49a   : > { %v873_v28 = vpop.xlane.xlu1 %872 }
 0x49b   : > { %1627 = vrcp.f32 %v873_v28 }
 0x49e   : > { %v546_v29 = vpop.permute.xlu1 %545 }
 0x49f   : > { %v654_v30 = vadd.f32 %v653_v55, %v546_v29  ;;  %v924_v55 = vld [vmem:[%s1925_s8 + $0x4] sm:$0xf] }
 0x4a0   : > { %v929_v57 = vsel %vm695_vm1, %v924_v55, 0 }
 0x4a1   : > { %v674_v34 = vpack.c.bf16 %v654_v30, %v654_v30  ;;  %v1626_v35 = vpop.eup %1625  ;;  %1549 = vmatpush3.bf16.msra.mxu1 %v929_v57 }
 0x4a2   : > { %v432_v36 = vpop.permute.xlu1 %431  ;;  %v750_v41 = vmul.f32 %v1626_v35, %v1622_v20  ;;  %1560 = vmatprep.subr.bf16.mxu1 %v1646_v39 }
 0x4a3   : > { %v756_v38 = vsel %vm739_vm5, %v674_v34, 0  ;;  %v501_v40 = vadd.f32 %v1788_v46, %v432_v36  ;;  %v521_v46 = vld [vmem:[%s1924_s7 + $0x30] sm:$0xff] }
 0x4a4   : > { %1531 = vmatpush3.bf16.xpose.msra.mxu0 %v756_v38  ;;  %v751_v45 = vpack.c.bf16 %v750_v41, %v750_v41 }
 0x4a5   : > { %v1017_v42 = vpack.c.bf16 %v501_v40, %v501_v40  ;;  %1542 = vmatprep.subr.bf16.mxu0 %v1646_v39  ;;  %v1628_v47 = vpop.eup %1627 }
 0x4a6   : > { %v875_v50 = vmul.f32 %v1628_v47, %v1624_v22  ;;  %v536_v58 = vpop.permute.xlu1 %535 }
 0x4a7   : > { %1020 = vxpose.xlu1.c.b16.start.end [1/1] (short) (narrow) %v1017_v42, 16  ;;  %v646_v8 = vadd.f32 %v1766_v31, %v536_v58 }
 0x4a8   : > { %v876_v51 = vpack.c.bf16 %v875_v50, %v875_v50 }
 0x4ab   : > { %1533 = vmatmul.mubr.msk.bf16.vlgmr.msra.gmra.mrb[8].mxu0 %vm739_vm5, %v751_v45  ;;  %436 = vperm.xlu1 %1610, %v418_v44  }
 0x4ac   : > { %1543 = vmatpush3.bf16.xpose.msra.mxu0 %v881_v48  ;;  %1544 = vmatprep.mubr.msk.bf16.mxu0 %vm1647_vm2, %v1646_v39 }
 0x4ad   : > { %1554 = vmatprep.subr.bf16.mxu0 %v1646_v39 }
 0x4af   : > { %555 = vperm.xlu1 %1610, %v521_v46  }
 0x4b3   : > { %1545 = vmatmul.mubr.msk.bf16.vlgmr.msra.gmra.mrb[12].mxu0 %vm739_vm5, %v876_v51 }
 0x4b4   : > { %1556 = vmatprep.mubr.msk.bf16.mxu0 %vm1647_vm2, %v1646_v39  ;;  %1555 = vmatpush3.bf16.msra.mxu0 %v975_v53 }
 0x4b5   : > { %1566 = vmatprep.subr.bf16.mxu0 %v1646_v39 }
 0x50d   : > { %v1028_v59 = vpop.trf.xlu1 }
 0x52a   : > { %v437_v60 = vpop.permute.xlu1 %436 }
 0x52b   : > { %v504_v61 = vadd.f32 %v1790_v49, %v437_v60  ;;  %v1018_v49 = vpack.c.bf16 %v646_v8, %v646_v8 }
 0x52d   : > { %v1189_v62 = vpack.c.bf16 %v504_v61, %v504_v61  ;;  %v1040_v14 = vsel %vm695_vm1, %v1018_v49, 0 }
 0x52e   : > { %v556_v1 = vpop.permute.xlu1 %555 }
 0x52f   : > { %1192 = vxpose.xlu1.c.b16.start.end [1/1] (short) (narrow) %v1189_v62, 16  ;;  %v662_v2 = vadd.f32 %v1792_v54, %v556_v1 }
 0x531   : > { %v1019_v3 = vpack.c.bf16 %v662_v2, %v662_v2 }
 0x533   : > { %v1098_v9 = vsel %vm739_vm5, %v1019_v3, 0 }
 0x57e   : > { %v792_v4 = vpop.f32.mrb[8].mxu0 }
 0x57f   : > { %v798_v5 = vpack.c.bf16 %v792_v4, %v792_v4  ;;  %v1534_v6 = vpop.f32.mrb[9].mxu0 }
 0x580   : > { %v795_v7 = vpop.f32.mrb[10].mxu0 }
 0x581   : > { %v1535_v10 = vpop.f32.mrb[11].mxu0  ;;  %1557 = vmatmul.mubr.msk.bf16.vlgmr.msra.gmra.mrb[16].mxu0 %vm691_vm3, %v798_v5 }
 0x582   : > { %1567 = vmatpush3.bf16.xpose.msra.mxu0 %v1098_v9  ;;  %1568 = vmatprep.mubr.msk.bf16.mxu0 %vm1647_vm2, %v1646_v39 }
 0x583   : > { %1578 = vmatprep.subr.bf16.mxu0 %v1646_v39 }
 0x586   : > { %v917_v54 = vpop.f32.mrb[12].mxu0 }
 0x587   : > { %v923_v11 = vpack.c.bf16 %v917_v54, %v917_v54  ;;  %v1546_v12 = vpop.f32.mrb[13].mxu0 }
 0x588   : > { %v920_v13 = vpop.f32.mrb[14].mxu0 }
 0x589   : > { %v1547_v15 = vpop.f32.mrb[15].mxu0  ;;  %1551 = vmatmul.mubr.msk.bf16.vlgmr.msra.gmra.mrb[12].mxu1 %vm691_vm3, %v923_v11 }
 0x58a   : > { %1561 = vmatpush3.bf16.msra.mxu1 %v1040_v14  ;;  %1562 = vmatprep.mubr.msk.bf16.mxu1 %vm1647_vm2, %v1646_v39 }
 0x58b   : > { %1572 = vmatprep.subr.bf16.mxu1 %v1646_v39 }
 0x591   : > { %1563 = vmatmul.mubr.msk.bf16.vlgmr.msra.gmra.mrb[16].mxu1 %vm691_vm3, %v1028_v59 }
 0x592   : > { %1574 = vmatprep.mubr.msk.bf16.mxu1 %vm1647_vm2, %v1646_v39 }
 0x595   : > { %v1200_v48 = vpop.trf.xlu1 }
 0x654   : > { %v1011_v31 = vpop.f32.mrb[16].mxu0 }
 0x655   : > { %v1558_v16 = vpop.f32.mrb[17].mxu0 }
 0x656   : > { %v1014_v17 = vpop.f32.mrb[18].mxu0 }
 0x657   : > { %v1559_v18 = vpop.f32.mrb[19].mxu0 }
 0x65c   : > { %v965_v19 = vpop.f32.mrb[12].mxu1 }
 0x65d   : > { %v1865_v20 = vadd.f32 %v1011_v31, %v965_v19  ;;  %v1552_v21 = vpop.f32.mrb[13].mxu1 }
 0x65e   : > { %v968_v22 = vpop.f32.mrb[14].mxu1 }
 0x65f   : > { %v1553_v23 = vpop.f32.mrb[15].mxu1 }
 0x664   : > { %v1076_v24 = vpop.f32.mrb[16].mxu1 }
 0x665   : > { %v1077_v25 = vadd.f32 %v1076_v24, %v1802_v63  ;;  %v1564_v26 = vpop.f32.mrb[17].mxu1  ;;  %v1472_v24 = vld [vmem:[%s1926_s9] ss:$0 sm:$0xff] }
 0x666   : > { %v1079_v27 = vpop.f32.mrb[18].mxu1 }
 0x667   : > { %v1565_v28 = vpop.f32.mrb[19].mxu1  ;;  %v1082_v29 = vsel %vm739_vm5, %v1077_v25, -inf }
 0x668   : > { %1083 = vmax.xlane.f32.xlu0 %v1082_v29 }
 0x6f5   : > { %v1084_v30 = vpop.xlane.xlu0 %1083 }
 0x6f6   : > { %v1085_v32 = vsub.f32 %v1077_v25, %v1084_v30 }
 0x6f8   : > { %v1086_v34 = vmul.f32 1.442695, %v1085_v32 }
 0x6fa   : > { %1629 = vpow2.f32 %v1086_v34 }
 0x704   : > { %v1630_v35 = vpop.eup %1629 }
 0x705   : > { %v1088_v36 = vsel %vm739_vm5, %v1630_v35, 0.0 }
 0x706   : > { %1089 = vadd.xlane.f32.xlu0 %v1088_v36 }
 0x71c   : > { %540 = vperm.xlu0 %1611, %v518_v37  }
 0x793   : > { %v1090_v38 = vpop.xlane.xlu0 %1089 }
 0x794   : > { %1631 = vrcp.f32 %v1090_v38 }
 0x79b   : > { %v541_v40 = vpop.permute.xlu0 %540 }
 0x79c   : > { %v649_v41 = vadd.f32 %v1768_v33, %v541_v40  ;;  %v1141_v33 = vld [vmem:[%s1925_s8 + $0x8] sm:$0xf] }
 0x79d   : > { %v1146_v46 = vsel %vm695_vm1, %v1141_v33, 0 }
 0x79e   : > { %v1632_v42 = vpop.eup %1631  ;;  %v1190_v44 = vpack.c.bf16 %v649_v41, %v649_v41  ;;  %1573 = vmatpush3.bf16.msra.mxu1 %v1146_v46 }
 0x79f   : > { %v1092_v43 = vmul.f32 %v1632_v42, %v1630_v35  ;;  %1584 = vmatprep.subr.bf16.mxu1 %v1646_v39 }
 0x7a0   : > { %v1212_v47 = vsel %vm695_vm1, %v1190_v44, 0 }
 0x7a1   : > { %v1093_v45 = vpack.c.bf16 %v1092_v43, %v1092_v43 }
 0x7a3   : > { %1569 = vmatmul.mubr.msk.bf16.vlgmr.msra.gmra.mrb[20].mxu0 %vm739_vm5, %v1093_v45 }
 0x7a4   : > { %1579 = vmatpush3.bf16.msra.mxu0 %v1212_v47  ;;  %1580 = vmatprep.mubr.msk.bf16.mxu0 %vm1647_vm2, %v1646_v39 }
 0x7a5   : > { %1590 = vmatprep.subr.bf16.mxu0 %v1646_v39 }
 0x7ab   : > { %1581 = vmatmul.mubr.msk.bf16.vlgmr.msra.gmra.mrb[24].mxu0 %vm691_vm3, %v1200_v48 }
 0x7ac   : > { %1592 = vmatprep.mubr.msk.bf16.mxu0 %vm1647_vm2, %v1646_v39 }
 0x876   : > { %v1134_v50 = vpop.f32.mrb[20].mxu0 }
 0x877   : > { %v1140_v51 = vpack.c.bf16 %v1134_v50, %v1134_v50  ;;  %v1570_v52 = vpop.f32.mrb[21].mxu0 }
 0x878   : > { %v1137_v53 = vpop.f32.mrb[22].mxu0 }
 0x879   : > { %v1571_v55 = vpop.f32.mrb[23].mxu0  ;;  %1575 = vmatmul.mubr.msk.bf16.vlgmr.msra.gmra.mrb[20].mxu1 %vm691_vm3, %v1140_v51 }
 0x87a   : > { %1586 = vmatprep.mubr.msk.bf16.mxu1 %vm1647_vm2, %v1646_v39  ;;  %v522_v39 = vld [vmem:[%s1924_s7 + $0x38] sm:$0xff] }
 0x87e   : > { %v1248_v57 = vpop.f32.mrb[24].mxu0 }
 0x87f   : > { %v1249_v58 = vadd.f32 %v1248_v57, %v1802_v63  ;;  %v1582_v59 = vpop.f32.mrb[25].mxu0  ;;  %v1313_v63 = vld [vmem:[%s1925_s8 + $0xc] sm:$0xf] }
 0x880   : > { %v1251_v60 = vpop.f32.mrb[26].mxu0  ;;  %v1318_v6 = vsel %vm695_vm1, %v1313_v63, 0 }
 0x881   : > { %v1583_v61 = vpop.f32.mrb[27].mxu0  ;;  %v1254_v62 = vsel %vm739_vm5, %v1249_v58, -inf  ;;  %1591 = vmatpush3.bf16.msra.mxu0 %v1318_v6 }
 0x882   : > { %1255 = vmax.xlane.f32.xlu0 %v1254_v62 }
 0x90f   : > { %v1256_v1 = vpop.xlane.xlu0 %1255 }
 0x910   : > { %v1257_v2 = vsub.f32 %v1249_v58, %v1256_v1 }
 0x912   : > { %v1258_v3 = vmul.f32 1.442695, %v1257_v2 }
 0x914   : > { %1633 = vpow2.f32 %v1258_v3 }
 0x91e   : > { %v1634_v4 = vpop.eup %1633 }
 0x91f   : > { %v1260_v5 = vsel %vm739_vm5, %v1634_v4, 0.0 }
 0x920   : > { %1261 = vadd.xlane.f32.xlu1 %v1260_v5 }
 0x931   : > { %560 = vperm.xlu1 %1610, %v522_v39  }
 0x94c   : > { %v1182_v7 = vpop.f32.mrb[20].mxu1 }
 0x94d   : > { %v1188_v8 = vadd.f32 %v1182_v7, %v1865_v20  ;;  %v1576_v9 = vpop.f32.mrb[21].mxu1 }
 0x94e   : > { %v1185_v10 = vpop.f32.mrb[22].mxu1 }
 0x94f   : > { %v1577_v49 = vpop.f32.mrb[23].mxu1 }
 0x9ad   : > { %v1262_v54 = vpop.xlane.xlu1 %1261 }
 0x9ae   : > { %1635 = vrcp.f32 %v1262_v54 }
 0x9b1   : > { %v561_v11 = vpop.permute.xlu1 %560 }
 0x9b2   : > { %v665_v12 = vadd.f32 %v1794_v56, %v561_v11 }
 0x9b4   : > { %v1191_v13 = vpack.c.bf16 %v665_v12, %v665_v12 }
 0x9b6   : > { %v1270_v14 = vsel %vm739_vm5, %v1191_v13, 0 }
 0x9b7   : > { %1585 = vmatpush3.bf16.xpose.msra.mxu1 %v1270_v14 }
 0x9b8   : > { %v1636_v15 = vpop.eup %1635 }
 0x9b9   : > { %v1264_v31 = vmul.f32 %v1636_v15, %v1634_v4 }
 0x9bb   : > { %v1265_v16 = vpack.c.bf16 %v1264_v31, %v1264_v31 }
 0x9be   : > { %1587 = vmatmul.mubr.msk.bf16.vlgmr.msra.gmra.mrb[24].mxu1 %vm739_vm5, %v1265_v16 }
 0xa91   : > { %v1306_v17 = vpop.f32.mrb[24].mxu1 }
 0xa92   : > { %v1312_v18 = vpack.c.bf16 %v1306_v17, %v1306_v17  ;;  %v1588_v19 = vpop.f32.mrb[25].mxu1 }
 0xa93   : > { %v1309_v20 = vpop.f32.mrb[26].mxu1 }
 0xa94   : > { %v1589_v21 = vpop.f32.mrb[27].mxu1  ;;  %1593 = vmatmul.mubr.msk.bf16.vlgmr.msra.gmra.mrb[28].mxu0 %vm691_vm3, %v1312_v18 }
 0xb67   : > { %v1354_v22 = vpop.f32.mrb[28].mxu0 }
 0xb68   : > { %v1360_v23 = vadd.f32 %v1354_v22, %v1188_v8  ;;  %v1594_v56 = vpop.f32.mrb[29].mxu0 }
 0xb69   : > { %v1357_v25 = vpop.f32.mrb[30].mxu0 }
 0xb6a   : > { %v1361_v26 = vadd.f32 %v1360_v23, %v1718_v0  ;;  %v1595_v27 = vpop.f32.mrb[31].mxu0 }
 0xb6c   : > { %v1369_v28 = vadd.f32 %v1472_v24, %v1361_v26 }
 0xb6e   : > { %1370 = vst.msk [vmem:[%s374_s20] sm:$0xff] %vm381_vm0, %v1369_v28 }
 0xb6f PF: > { %s20_s13 = sadd.s32 1, %s1643_s13  }
 0xb70   : > { %p17_p4 = scmp.ge.s32.totalorder %s20_s13, 4  }
 0xb72   :  { %19 = sbr.rel (!%p17_p4) target bundleno = 1 (0x1), region = 93 }

</bundles_post_ra>
